<compile_context>
chip_gen: v7x
topology: tpu7x:2x2x1
jax: 0.10.0
libtpu: 0.0.40
codegen_flags: <defaults>
</compile_context>

<pallas_src>
import math

import jax
import jax.numpy as jnp
from jax import lax
from jax.experimental import pallas as pl
from jax.experimental.pallas import tpu as pltpu

HID = 128           # GRU hidden size per direction
INP = 64            # GRU input size
FEAT = 2 * HID      # bidirectional concat -> 256
BAND = 6            # Gaussian half-width: exp(-36) ~ 2e-16 (< f32 eps)


def _sigmoid(x):
    return 1.0 / (1.0 + jnp.exp(-x))


# ---------------------------------------------------------------------------
# Kernel 1: bidirectional GRU (batch=1) + LayerNorm([256]) + ReLU
# ---------------------------------------------------------------------------
def gru_ln_kernel(x_ref, wih_ref, bih_ref, whh_ref, bhh_ref,
                  gamma_ref, beta_ref, out_ref, gi_scr, feat_scr):
    L = x_ref.shape[0]
    H = HID

    # Input projections of BOTH directions in one (L,64)@(64,768) bf16 MXU
    # matmul.  Column layout (gate-interleaved): [r_f|r_b|z_f|z_b|n_f|n_b].
    gi_scr[...] = jnp.dot(x_ref[...].astype(jnp.bfloat16), wih_ref[...],
                          preferred_element_type=jnp.float32) + bih_ref[...]

    # Recurrent weight / bias hoisted out of the time loop.
    whh = whh_ref[...]          # (256, 768) bf16, blockdiag(fwd, bwd)
    bhh = bhh_ref[...]          # (1, 768) f32

    def step(t, h):
        # h = [h_fwd | h_bwd] (1,256); fwd consumes x[t], bwd consumes x[L-1-t].
        tb = L - 1 - t
        # ONE (1,256)@(256,768) recurrence matmul per step (merged fwd+bwd):
        # K=256 fills the MXU on v6e/v7x and halves issues vs two K=128 dots.
        gh = jnp.dot(h.astype(jnp.bfloat16), whh,
                     preferred_element_type=jnp.float32) + bhh
        gi_r = jnp.concatenate([gi_scr[pl.ds(t, 1), 0:H],
                                gi_scr[pl.ds(tb, 1), H:2 * H]], axis=1)
        gi_z = jnp.concatenate([gi_scr[pl.ds(t, 1), 2 * H:3 * H],
                                gi_scr[pl.ds(tb, 1), 3 * H:4 * H]], axis=1)
        gi_n = jnp.concatenate([gi_scr[pl.ds(t, 1), 4 * H:5 * H],
                                gi_scr[pl.ds(tb, 1), 5 * H:6 * H]], axis=1)
        r = _sigmoid(gi_r + gh[:, 0:2 * H])
        z = _sigmoid(gi_z + gh[:, 2 * H:4 * H])
        n = jnp.tanh(gi_n + r * gh[:, 4 * H:6 * H])
        h_new = (1.0 - z) * n + z * h
        # Hidden states land directly in the (L, 256) feature scratch:
        # fwd state of time t -> lanes 0:128 of row t, bwd state of time tb ->
        # lanes 128:256 of row tb (no concat / relayout before LayerNorm).
        feat_scr[pl.ds(t, 1), 0:H] = h_new[:, 0:H]
        feat_scr[pl.ds(tb, 1), H:2 * H] = h_new[:, H:2 * H]
        return h_new

    h0 = jnp.zeros((1, FEAT), jnp.float32)
    # Full unroll only for short sequences; partial unroll keeps the basic
    # block (vreg pressure, i-fetch, compile time) bounded for long L.
    lax.fori_loop(0, L, step, h0, unroll=True if L <= 16 else 8)

    # LayerNorm (eps=1e-5, biased variance) + ReLU; single lane-dense store.
    feat = feat_scr[...]
    mean = jnp.mean(feat, axis=1, keepdims=True)
    var = jnp.mean((feat - mean) ** 2, axis=1, keepdims=True)
    normed = (feat - mean) * lax.rsqrt(var + 1e-5)
    out_ref[...] = jnp.maximum(normed * gamma_ref[...] + beta_ref[...], 0.0)


# ---------------------------------------------------------------------------
# Kernel 2: per-layer linear+sigmoid, exact rank, MXU gathers, soft indexing
# ---------------------------------------------------------------------------
def mask_kernel(n_ref, feat_ref, w_ref, kmask_ref, out_ref):
    """Processes a block of `lb` layers per grid step."""
    lb, _, n_pad = out_ref.shape
    base = pl.program_id(0) * lb

    # Constants hoisted out of the per-layer loop.
    iota_r = lax.broadcasted_iota(jnp.int32, (1, n_pad), 1).astype(jnp.float32)
    iota_c = lax.broadcasted_iota(jnp.int32, (n_pad, 1), 0).astype(jnp.float32)
    ones_row_bf = jnp.ones((1, n_pad), jnp.bfloat16)

    for b in range(lb):                      # small static layer loop
        nf = n_ref[base + b].astype(jnp.float32)       # true layer width
        valid_row = iota_r < nf
        validf = valid_row.astype(jnp.float32)

        # logits + sigmoid (bf16 MXU operands, f32 accumulation); padded lanes
        # forced below every real sigmoid output so they always rank last.
        logits = jnp.dot(feat_ref[b].astype(jnp.bfloat16), w_ref[b],
                         preferred_element_type=jnp.float32)       # (1, n_pad)
        cur_row = jnp.where(valid_row, _sigmoid(logits), -1.0)

        # Bit-exact (1,n)->(n,1) relayout (pure data movement): sublane
        # broadcast to a fully tile-aligned (128, n_pad) slab, XLU transpose,
        # slice lane 0.  Replaces the old O(n_pad^2) eye-select + lane-reduce.
        cur_col = jnp.transpose(jnp.broadcast_to(cur_row, (128, n_pad)))[:, 0:1]

        # Stable descending rank with index tie-break (always a permutation,
        # even on exact ties).  The sublane reduction is a (1,n)@(n,n) matmul
        # of exact 0/1 values: bf16 operands (exact), f32 accumulation ->
        # single MXU pass, no f32xf32 emulation, no axis=0 XLU reductions.
        behind = (cur_col > cur_row) | ((cur_col == cur_row) & (iota_c < iota_r))
        r_row = jnp.dot(ones_row_bf, behind.astype(jnp.bfloat16),
                        preferred_element_type=jnp.float32)        # exact ints

        # Permutation matrices for the MXU gathers:
        #   pt[j,k] = (rank[k] == j)          gather-by-rank
        #   qt[i,j] = ((n-1) - rank[j] == i)  lookup at idx[j] = soft_rank - 1
        pt = iota_c == r_row
        qt = (((nf - 1.0) - iota_c) == r_row).astype(jnp.float32)

        # c_mask[k] = k_mask[rank[k]]  (0/1 operands -> bf16 is exact)
        c_mask = jnp.dot(kmask_ref[b].astype(jnp.bfloat16),
                         pt.astype(jnp.bfloat16),
                         preferred_element_type=jnp.float32) * validf

        # Band-limited Gaussian soft-indexing: idx is an exact integer rank,
        # so exp(-(k-idx)^2) < 1.5e-11 for |k-idx| > 5 and F/G become 13-tap
        # convolutions built from pltpu.roll with host-constant weights (zero
        # in-kernel transcendentals).  n <= n_pad - BAND (wrapper invariant)
        # guarantees circular rolls never wrap real data into the valid range.
        #   F(i) = sum_k exp(-(k-i)^2) c_mask[k] valid[k]
        #   G(i) = sum_k exp(-(k-i)^2) valid[k]
        band_src = jnp.concatenate([c_mask, validf], axis=0)       # (2, n_pad)
        acc = band_src
        for d in range(1, BAND + 1):
            g = math.exp(-float(d * d))
            acc = acc + g * (pltpu.roll(band_src, d, axis=1)
                             + pltpu.roll(band_src, n_pad - d, axis=1))

        # Evaluate F,G at idx[j] = (n-1) - rank[j] (MXU gather) and apply the
        # hard straight-through estimator: soft -> 2*soft - (soft >= 0.5).
        # These value-carrying gathers stay f32 x f32 for output accuracy.
        fg_at = jnp.dot(acc, qt, preferred_element_type=jnp.float32)
        f_at = fg_at[0:1, :]
        g_at = fg_at[1:2, :]
        soft = f_at / jnp.where(g_at > 0.0, g_at, 1.0)
        soft = 2.0 * soft - (soft >= 0.5).astype(jnp.float32)
        soft = jnp.where(valid_row, soft, 0.0)

        # out[k] = soft[rank[k]]  (MXU gather, lane-dense (1, n_pad) store).
        out_ref[b] = jnp.dot(soft, pt.astype(jnp.float32),
                             preferred_element_type=jnp.float32)


# ---------------------------------------------------------------------------
# Wrappers
# ---------------------------------------------------------------------------
def _round_up(v, m):
    return ((v + m - 1) // m) * m


def _pick_layer_block(L, n_pad):
    # Amortize the ~0.35us/step fixed grid cost for narrow layers, but keep
    # >=2 grid steps (when L allows) so the "parallel" layer axis can still be
    # split across v7x's two TensorCores.  Wide layers keep one layer per step
    # to bound the (n_pad, n_pad) temporaries' VMEM footprint.
    if n_pad > 512:
        return 1
    lb = min(4, L)
    while lb > 1 and _round_up(L, lb) // lb < 2:
        lb -= 1
    return max(lb, 1)


def _vmem_cap_bytes():
    # v5e/v6e: 128 MiB VMEM per TensorCore, v7x: 64 MiB.
    try:
        return int(pltpu.get_tpu_info().vmem_capacity_bytes)
    except Exception:
        return 64 << 20                       # conservative fallback (v7x)


def _mask_vmem_limit(lb, n_pad):
    # Double-buffered IO blocks + worst-case per-layer (n_pad, n_pad) live
    # temporaries (behind/pt/qt and their casts), clamped to 3/4 of VMEM.
    io = 2 * (lb * FEAT * 4 + lb * FEAT * n_pad * 2 + 2 * lb * n_pad * 4)
    tmp = lb * n_pad * n_pad * 16
    want = io + tmp + (8 << 20)
    # TODO(synk): for n_pad >~ 2048 on v7x (64 MiB VMEM) the (n_pad, n_pad)
    # matrices should additionally be tiled over <=512-column blocks.
    return int(min(max(want, 32 << 20), _vmem_cap_bytes() * 3 // 4))


def gru_features(params):
    x = params["inputs"]                                       # (L, 64)
    L = x.shape[0]
    vmem = lambda: pl.BlockSpec(memory_space=pltpu.MemorySpace.VMEM)
    return pl.pallas_call(
        gru_ln_kernel,
        out_shape=jax.ShapeDtypeStruct((L, FEAT), jnp.float32),
        in_specs=[vmem() for _ in range(7)],
        out_specs=vmem(),
        scratch_shapes=[
            pltpu.VMEM((L, 6 * HID), jnp.float32),   # batched input projections
            pltpu.VMEM((L, FEAT), jnp.float32),      # fwd|bwd hidden -> features
        ],
    )(x, params["wih_cat"], params["bih_cat"], params["whh_cat"],
      params["bhh_cat"], params["ln_gamma"], params["ln_beta"])


def fused_layer_masks(params, feat, kmask_all):
    """All per-layer masks in ONE pallas_call; `layer_block` layers per step."""
    L_pad, _, n_pad = kmask_all.shape
    lb = params["layer_block"]
    grid_spec = pltpu.PrefetchScalarGridSpec(
        num_scalar_prefetch=1,                 # per-layer true widths (SMEM)
        grid=(L_pad // lb,),
        in_specs=[
            pl.BlockSpec((lb, 1, FEAT), lambda i, n_ref: (i, 0, 0)),
            # NOTE: if the (FEAT, n_pad) weight DMA ever becomes exposed for
            # very wide layers, deepen its pipeline with
            # pipeline_mode=pl.Buffered(3) on this spec.
            pl.BlockSpec((lb, FEAT, n_pad), lambda i, n_ref: (i, 0, 0)),
            pl.BlockSpec((lb, 1, n_pad), lambda i, n_ref: (i, 0, 0)),
        ],
        out_specs=pl.BlockSpec((lb, 1, n_pad), lambda i, n_ref: (i, 0, 0)),
    )
    return pl.pallas_call(
        mask_kernel,
        out_shape=jax.ShapeDtypeStruct((L_pad, 1, n_pad), jnp.float32),
        grid_spec=grid_spec,
        compiler_params=pltpu.CompilerParams(
            # layers are independent -> v7x's two TensorCores may split them
            dimension_semantics=("parallel",),
            vmem_limit_bytes=_mask_vmem_limit(lb, n_pad),
        ),
    )(params["n_arr"], feat, params["fc_all"], kmask_all)


def importance_generator_sr_forward(params, k_masks, structure):
    """Eval-mode forward.
    # TODO(synk): training branch uses torchsort.soft_rank(reg=0.005) (a truly
    # soft rank) and no hard thresholding; only the eval path is implemented.
    """
    L = len(structure)
    n_pad = params["n_pad"]
    L_pad = params["L_pad"]
    assert max(structure) + BAND <= n_pad

    feat = gru_features(params)                                # (L, 256)
    feat = jnp.zeros((L_pad, 1, FEAT), jnp.float32).at[:L, 0, :].set(feat)

    kmask_all = jnp.zeros((L_pad, 1, n_pad), jnp.float32)
    for i, n in enumerate(structure):
        kmask_all = kmask_all.at[i, 0, :n].set(k_masks[i].astype(jnp.float32))

    out = fused_layer_masks(params, feat, kmask_all)           # (L_pad, 1, n_pad)
    return [out[i, 0, :n] for i, n in enumerate(structure)]


# ---------------------------------------------------------------------------
# Parameter construction (matches the PyTorch module's fresh init)
# ---------------------------------------------------------------------------
def init_params(key, structure):
    L = len(structure)
    n_pad = _round_up(max(structure) + BAND, 128)
    layer_block = _pick_layer_block(L, n_pad)
    L_pad = _round_up(L, layer_block)
    ks = jax.random.split(key, 9 + L)

    # nn.init.orthogonal_ on self.inputs (L,1,64) -> orthonormal rows (L,64)
    q, _ = jnp.linalg.qr(jax.random.normal(ks[0], (INP, L), jnp.float32))
    inputs = q.T.astype(jnp.float32)

    b = float(1.0 / (HID ** 0.5))        # PyTorch GRU init: U(-1/sqrt(H), 1/sqrt(H))

    def u(k, shape):
        return jax.random.uniform(k, shape, jnp.float32, -b, b)

    wih_f = u(ks[1], (3 * HID, INP))     # PyTorch layouts (3H, in) / (3H, H)
    whh_f = u(ks[2], (3 * HID, HID))
    bih_f = u(ks[3], (3 * HID,))
    bhh_f = u(ks[4], (3 * HID,))
    wih_b = u(ks[5], (3 * HID, INP))
    whh_b = u(ks[6], (3 * HID, HID))
    bih_b = u(ks[7], (3 * HID,))
    bhh_b = u(ks[8], (3 * HID,))

    def gate_blocks(w_t):                # w_t: (K, 3H), columns [r|z|n]
        return [w_t[:, g * HID:(g + 1) * HID] for g in range(3)]

    # Gate-interleaved column layout [r_f|r_b|z_f|z_b|n_f|n_b]:
    #   * input-projection weight (64, 768)  batches both directions,
    #   * recurrent weight (256, 768) = blockdiag(whh_f, whh_b): one
    #     (1,256)@(256,768) matmul advances both directions per timestep.
    fi, bi = gate_blocks(wih_f.T), gate_blocks(wih_b.T)
    wih_cat = jnp.concatenate(
        [blk for g in range(3) for blk in (fi[g], bi[g])], axis=1)

    fh, bh = gate_blocks(whh_f.T), gate_blocks(whh_b.T)
    zero_h = jnp.zeros((HID, HID), jnp.float32)
    whh_cat = jnp.concatenate(
        [blk for g in range(3)
         for blk in (jnp.concatenate([fh[g], zero_h], axis=0),
                     jnp.concatenate([zero_h, bh[g]], axis=0))], axis=1)

    def gate_bias(bf, bb):
        return jnp.concatenate(
            [p for g in range(3) for p in (bf[g * HID:(g + 1) * HID],
                                           bb[g * HID:(g + 1) * HID])])[None, :]

    params = dict(
        n_pad=n_pad,
        L_pad=L_pad,
        layer_block=layer_block,
        n_arr=jnp.asarray(list(structure) + [0] * (L_pad - L), jnp.int32),
        inputs=inputs,
        wih_cat=wih_cat.astype(jnp.bfloat16),                     # (64, 768)
        whh_cat=whh_cat.astype(jnp.bfloat16),                     # (256, 768)
        bih_cat=gate_bias(bih_f, bih_b).astype(jnp.float32),      # (1, 768)
        bhh_cat=gate_bias(bhh_f, bhh_b).astype(jnp.float32),      # (1, 768)
        ln_gamma=jnp.ones((1, FEAT), jnp.float32),                # fresh LayerNorm
        ln_beta=jnp.zeros((1, FEAT), jnp.float32),
    )

    bl = float(1.0 / (FEAT ** 0.5))      # nn.Linear(256, n, bias=False) init
    fc_all = jnp.zeros((L_pad, FEAT, n_pad), jnp.float32)
    for i, n in enumerate(structure):
        w = jax.random.uniform(ks[9 + i], (n, FEAT), jnp.float32, -bl, bl)
        fc_all = fc_all.at[i, :, :n].set(w.T)        # weight_norm = identity at init
    params["fc_all"] = fc_all.astype(jnp.bfloat16)
    return params


if __name__ == "__main__":
    structure = (16, 32, 64)             # small demo structure (L = 3 layers)
    key = jax.random.PRNGKey(0)
    kp, km = jax.random.split(key)
    params = init_params(kp, structure)

    mask_keys = jax.random.split(km, len(structure))
    k_masks = [
        (jax.random.uniform(mask_keys[i], (n,)) < 0.5).astype(jnp.float32)
        for i, n in enumerate(structure)
    ]

    outs = importance_generator_sr_forward(params, k_masks, structure)
    outs = [jax.block_until_ready(o) for o in outs]

    ok = all(o.shape == (n,) and o.dtype == jnp.float32
             and bool(jnp.all(jnp.isfinite(o)))
             for o, n in zip(outs, structure))
    if ok:
        print("KERNEL_OK")
</pallas_src>

<mosaic_0001>
module attributes {stable_mosaic.version = 11 : i64} {
  func.func @gru_ln_kernel(%arg0: memref<3x64xf32, #tpu.memory_space<vmem>>, %arg1: memref<64x768xbf16, #tpu.memory_space<vmem>>, %arg2: memref<1x768xf32, #tpu.memory_space<vmem>>, %arg3: memref<256x768xbf16, #tpu.memory_space<vmem>>, %arg4: memref<1x768xf32, #tpu.memory_space<vmem>>, %arg5: memref<1x256xf32, #tpu.memory_space<vmem>>, %arg6: memref<1x256xf32, #tpu.memory_space<vmem>>, %arg7: memref<3x256xf32, #tpu.memory_space<vmem>>, %arg8: memref<3x768xf32, #tpu.memory_space<vmem>>, %arg9: memref<3x256xf32, #tpu.memory_space<vmem>>) attributes {dimension_semantics = [], scalar_prefetch = 0 : i64, scratch_operands = 2 : i64, tpu.core_type = #tpu.core_type<tc>} {
    %c0 = arith.constant 0 : index
    %c0_0 = arith.constant 0 : index
    %0 = vector.load %arg0[%c0, %c0_0] : memref<3x64xf32, #tpu.memory_space<vmem>>, vector<3x64xf32>
    %1 = arith.truncf %0 : vector<3x64xf32> to vector<3x64xbf16>
    %c0_1 = arith.constant 0 : index
    %c0_2 = arith.constant 0 : index
    %2 = vector.load %arg1[%c0_1, %c0_2] : memref<64x768xbf16, #tpu.memory_space<vmem>>, vector<64x768xbf16>
    %cst = arith.constant dense<0.000000e+00> : vector<3x768xf32>
    %3 = tpu.matmul %1, %2, %cst {dimension_numbers = #tpu.dot_dimension_numbers<[1], [0], [0], [1], [0, 0, 1, 1], [], []>} : vector<3x64xbf16>, vector<64x768xbf16>, vector<3x768xf32> -> vector<3x768xf32>
    %c0_3 = arith.constant 0 : index
    %c0_4 = arith.constant 0 : index
    %4 = vector.load %arg2[%c0_3, %c0_4] : memref<1x768xf32, #tpu.memory_space<vmem>>, vector<1x768xf32>
    %5 = vector.broadcast %4 : vector<1x768xf32> to vector<3x768xf32>
    %6 = arith.addf %3, %5 : vector<3x768xf32>
    %c0_5 = arith.constant 0 : index
    %c0_6 = arith.constant 0 : index
    %7 = vector.load %arg8[%c0_5, %c0_6] : memref<3x768xf32, #tpu.memory_space<vmem>>, vector<3x768xf32>
    tpu.vector_store %arg8[%c0_5, %c0_6], %6 {strides = array<i32>} : memref<3x768xf32, #tpu.memory_space<vmem>>, vector<3x768xf32>,
    %c0_7 = arith.constant 0 : index
    %c0_8 = arith.constant 0 : index
    %8 = vector.load %arg3[%c0_7, %c0_8] : memref<256x768xbf16, #tpu.memory_space<vmem>>, vector<256x768xbf16>
    %c0_9 = arith.constant 0 : index
    %c0_10 = arith.constant 0 : index
    %9 = vector.load %arg4[%c0_9, %c0_10] : memref<1x768xf32, #tpu.memory_space<vmem>>, vector<1x768xf32>
    %cst_11 = arith.constant 0.000000e+00 : f32
    %10 = vector.broadcast %cst_11 : f32 to vector<1x256xf32>
    %c0_i32 = arith.constant 0 : i32
    %c2_i32 = arith.constant 2 : i32
    %11 = arith.subi %c2_i32, %c0_i32 : i32
    %12 = arith.truncf %10 : vector<1x256xf32> to vector<1x256xbf16>
    %cst_12 = arith.constant dense<0.000000e+00> : vector<1x768xf32>
    %13 = tpu.matmul %12, %8, %cst_12 {dimension_numbers = #tpu.dot_dimension_numbers<[1], [0], [0], [1], [0, 0, 1, 1], [], []>} : vector<1x256xbf16>, vector<256x768xbf16>, vector<1x768xf32> -> vector<1x768xf32>
    %14 = arith.addf %13, %9 : vector<1x768xf32>
    %15 = arith.index_cast %c0_i32 : i32 to index
    %c0_13 = arith.constant 0 : index
    %16 = vector.load %arg8[%15, %c0_13] : memref<3x768xf32, #tpu.memory_space<vmem>>, vector<1x128xf32>
    %17 = arith.index_cast %11 : i32 to index
    %c128 = arith.constant 128 : index
    %18 = vector.load %arg8[%17, %c128] : memref<3x768xf32, #tpu.memory_space<vmem>>, vector<1x128xf32>
    %19 = tpu.concatenate %16, %18 in 1 : vector<1x128xf32>, vector<1x128xf32> -> vector<1x256xf32>
    %20 = arith.index_cast %c0_i32 : i32 to index
    %c256 = arith.constant 256 : index
    %21 = vector.load %arg8[%20, %c256] : memref<3x768xf32, #tpu.memory_space<vmem>>, vector<1x128xf32>
    %22 = arith.index_cast %11 : i32 to index
    %c384 = arith.constant 384 : index
    %23 = vector.load %arg8[%22, %c384] : memref<3x768xf32, #tpu.memory_space<vmem>>, vector<1x128xf32>
    %24 = tpu.concatenate %21, %23 in 1 : vector<1x128xf32>, vector<1x128xf32> -> vector<1x256xf32>
    %25 = arith.index_cast %c0_i32 : i32 to index
    %c512 = arith.constant 512 : index
    %26 = vector.load %arg8[%25, %c512] : memref<3x768xf32, #tpu.memory_space<vmem>>, vector<1x128xf32>
    %27 = arith.index_cast %11 : i32 to index
    %c640 = arith.constant 640 : index
    %28 = vector.load %arg8[%27, %c640] : memref<3x768xf32, #tpu.memory_space<vmem>>, vector<1x128xf32>
    %29 = tpu.concatenate %26, %28 in 1 : vector<1x128xf32>, vector<1x128xf32> -> vector<1x256xf32>
    %30 = vector.extract_strided_slice %14 {offsets = [0, 0], sizes = [1, 256], strides = [1, 1]} : vector<1x768xf32> to vector<1x256xf32>
    %31 = arith.addf %19, %30 : vector<1x256xf32>
    %cst_14 = arith.constant 0.000000e+00 : f32
    %32 = vector.broadcast %cst_14 : f32 to vector<1x256xf32>
    %33 = arith.subf %32, %31 : vector<1x256xf32>
    %34 = math.exp %33 : vector<1x256xf32>
    %cst_15 = arith.constant 1.000000e+00 : f32
    %35 = vector.broadcast %cst_15 : f32 to vector<1x256xf32>
    %36 = arith.addf %35, %34 : vector<1x256xf32>
    %cst_16 = arith.constant 1.000000e+00 : f32
    %37 = vector.broadcast %cst_16 : f32 to vector<1x256xf32>
    %38 = arith.divf %37, %36 : vector<1x256xf32>
    %39 = vector.extract_strided_slice %14 {offsets = [0, 256], sizes = [1, 256], strides = [1, 1]} : vector<1x768xf32> to vector<1x256xf32>
    %40 = arith.addf %24, %39 : vector<1x256xf32>
    %cst_17 = arith.constant 0.000000e+00 : f32
    %41 = vector.broadcast %cst_17 : f32 to vector<1x256xf32>
    %42 = arith.subf %41, %40 : vector<1x256xf32>
    %43 = math.exp %42 : vector<1x256xf32>
    %cst_18 = arith.constant 1.000000e+00 : f32
    %44 = vector.broadcast %cst_18 : f32 to vector<1x256xf32>
    %45 = arith.addf %44, %43 : vector<1x256xf32>
    %cst_19 = arith.constant 1.000000e+00 : f32
    %46 = vector.broadcast %cst_19 : f32 to vector<1x256xf32>
    %47 = arith.divf %46, %45 : vector<1x256xf32>
    %48 = vector.extract_strided_slice %14 {offsets = [0, 512], sizes = [1, 256], strides = [1, 1]} : vector<1x768xf32> to vector<1x256xf32>
    %49 = arith.mulf %38, %48 : vector<1x256xf32>
    %50 = arith.addf %29, %49 : vector<1x256xf32>
    %51 = math.tanh %50 : vector<1x256xf32>
    %cst_20 = arith.constant 1.000000e+00 : f32
    %52 = vector.broadcast %cst_20 : f32 to vector<1x256xf32>
    %53 = arith.subf %52, %47 : vector<1x256xf32>
    %54 = arith.mulf %53, %51 : vector<1x256xf32>
    %55 = arith.mulf %47, %10 : vector<1x256xf32>
    %56 = arith.addf %54, %55 : vector<1x256xf32>
    %57 = vector.extract_strided_slice %56 {offsets = [0, 0], sizes = [1, 128], strides = [1, 1]} : vector<1x256xf32> to vector<1x128xf32>
    %58 = arith.index_cast %c0_i32 : i32 to index
    %c0_21 = arith.constant 0 : index
    %59 = vector.load %arg9[%58, %c0_21] : memref<3x256xf32, #tpu.memory_space<vmem>>, vector<1x128xf32>
    tpu.vector_store %arg9[%58, %c0_21], %57 {strides = array<i32>} : memref<3x256xf32, #tpu.memory_space<vmem>>, vector<1x128xf32>,
    %60 = vector.extract_strided_slice %56 {offsets = [0, 128], sizes = [1, 128], strides = [1, 1]} : vector<1x256xf32> to vector<1x128xf32>
    %61 = arith.index_cast %11 : i32 to index
    %c128_22 = arith.constant 128 : index
    %62 = vector.load %arg9[%61, %c128_22] : memref<3x256xf32, #tpu.memory_space<vmem>>, vector<1x128xf32>
    tpu.vector_store %arg9[%61, %c128_22], %60 {strides = array<i32>} : memref<3x256xf32, #tpu.memory_space<vmem>>, vector<1x128xf32>,
    %c1_i32 = arith.constant 1 : i32
    %c2_i32_23 = arith.constant 2 : i32
    %63 = arith.subi %c2_i32_23, %c1_i32 : i32
    %64 = arith.truncf %56 : vector<1x256xf32> to vector<1x256xbf16>
    %cst_24 = arith.constant dense<0.000000e+00> : vector<1x768xf32>
    %65 = tpu.matmul %64, %8, %cst_24 {dimension_numbers = #tpu.dot_dimension_numbers<[1], [0], [0], [1], [0, 0, 1, 1], [], []>} : vector<1x256xbf16>, vector<256x768xbf16>, vector<1x768xf32> -> vector<1x768xf32>
    %66 = arith.addf %65, %9 : vector<1x768xf32>
    %67 = arith.index_cast %c1_i32 : i32 to index
    %c0_25 = arith.constant 0 : index
    %68 = vector.load %arg8[%67, %c0_25] : memref<3x768xf32, #tpu.memory_space<vmem>>, vector<1x128xf32>
    %69 = arith.index_cast %63 : i32 to index
    %c128_26 = arith.constant 128 : index
    %70 = vector.load %arg8[%69, %c128_26] : memref<3x768xf32, #tpu.memory_space<vmem>>, vector<1x128xf32>
    %71 = tpu.concatenate %68, %70 in 1 : vector<1x128xf32>, vector<1x128xf32> -> vector<1x256xf32>
    %72 = arith.index_cast %c1_i32 : i32 to index
    %c256_27 = arith.constant 256 : index
    %73 = vector.load %arg8[%72, %c256_27] : memref<3x768xf32, #tpu.memory_space<vmem>>, vector<1x128xf32>
    %74 = arith.index_cast %63 : i32 to index
    %c384_28 = arith.constant 384 : index
    %75 = vector.load %arg8[%74, %c384_28] : memref<3x768xf32, #tpu.memory_space<vmem>>, vector<1x128xf32>
    %76 = tpu.concatenate %73, %75 in 1 : vector<1x128xf32>, vector<1x128xf32> -> vector<1x256xf32>
    %77 = arith.index_cast %c1_i32 : i32 to index
    %c512_29 = arith.constant 512 : index
    %78 = vector.load %arg8[%77, %c512_29] : memref<3x768xf32, #tpu.memory_space<vmem>>, vector<1x128xf32>
    %79 = arith.index_cast %63 : i32 to index
    %c640_30 = arith.constant 640 : index
    %80 = vector.load %arg8[%79, %c640_30] : memref<3x768xf32, #tpu.memory_space<vmem>>, vector<1x128xf32>
    %81 = tpu.concatenate %78, %80 in 1 : vector<1x128xf32>, vector<1x128xf32> -> vector<1x256xf32>
    %82 = vector.extract_strided_slice %66 {offsets = [0, 0], sizes = [1, 256], strides = [1, 1]} : vector<1x768xf32> to vector<1x256xf32>
    %83 = arith.addf %71, %82 : vector<1x256xf32>
    %cst_31 = arith.constant 0.000000e+00 : f32
    %84 = vector.broadcast %cst_31 : f32 to vector<1x256xf32>
    %85 = arith.subf %84, %83 : vector<1x256xf32>
    %86 = math.exp %85 : vector<1x256xf32>
    %cst_32 = arith.constant 1.000000e+00 : f32
    %87 = vector.broadcast %cst_32 : f32 to vector<1x256xf32>
    %88 = arith.addf %87, %86 : vector<1x256xf32>
    %cst_33 = arith.constant 1.000000e+00 : f32
    %89 = vector.broadcast %cst_33 : f32 to vector<1x256xf32>
    %90 = arith.divf %89, %88 : vector<1x256xf32>
    %91 = vector.extract_strided_slice %66 {offsets = [0, 256], sizes = [1, 256], strides = [1, 1]} : vector<1x768xf32> to vector<1x256xf32>
    %92 = arith.addf %76, %91 : vector<1x256xf32>
    %cst_34 = arith.constant 0.000000e+00 : f32
    %93 = vector.broadcast %cst_34 : f32 to vector<1x256xf32>
    %94 = arith.subf %93, %92 : vector<1x256xf32>
    %95 = math.exp %94 : vector<1x256xf32>
    %cst_35 = arith.constant 1.000000e+00 : f32
    %96 = vector.broadcast %cst_35 : f32 to vector<1x256xf32>
    %97 = arith.addf %96, %95 : vector<1x256xf32>
    %cst_36 = arith.constant 1.000000e+00 : f32
    %98 = vector.broadcast %cst_36 : f32 to vector<1x256xf32>
    %99 = arith.divf %98, %97 : vector<1x256xf32>
    %100 = vector.extract_strided_slice %66 {offsets = [0, 512], sizes = [1, 256], strides = [1, 1]} : vector<1x768xf32> to vector<1x256xf32>
    %101 = arith.mulf %90, %100 : vector<1x256xf32>
    %102 = arith.addf %81, %101 : vector<1x256xf32>
    %103 = math.tanh %102 : vector<1x256xf32>
    %cst_37 = arith.constant 1.000000e+00 : f32
    %104 = vector.broadcast %cst_37 : f32 to vector<1x256xf32>
    %105 = arith.subf %104, %99 : vector<1x256xf32>
    %106 = arith.mulf %105, %103 : vector<1x256xf32>
    %107 = arith.mulf %99, %56 : vector<1x256xf32>
    %108 = arith.addf %106, %107 : vector<1x256xf32>
    %109 = vector.extract_strided_slice %108 {offsets = [0, 0], sizes = [1, 128], strides = [1, 1]} : vector<1x256xf32> to vector<1x128xf32>
    %110 = arith.index_cast %c1_i32 : i32 to index
    %c0_38 = arith.constant 0 : index
    %111 = vector.load %arg9[%110, %c0_38] : memref<3x256xf32, #tpu.memory_space<vmem>>, vector<1x128xf32>
    tpu.vector_store %arg9[%110, %c0_38], %109 {strides = array<i32>} : memref<3x256xf32, #tpu.memory_space<vmem>>, vector<1x128xf32>,
    %112 = vector.extract_strided_slice %108 {offsets = [0, 128], sizes = [1, 128], strides = [1, 1]} : vector<1x256xf32> to vector<1x128xf32>
    %113 = arith.index_cast %63 : i32 to index
    %c128_39 = arith.constant 128 : index
    %114 = vector.load %arg9[%113, %c128_39] : memref<3x256xf32, #tpu.memory_space<vmem>>, vector<1x128xf32>
    tpu.vector_store %arg9[%113, %c128_39], %112 {strides = array<i32>} : memref<3x256xf32, #tpu.memory_space<vmem>>, vector<1x128xf32>,
    %c2_i32_40 = arith.constant 2 : i32
    %c2_i32_41 = arith.constant 2 : i32
    %115 = arith.subi %c2_i32_41, %c2_i32_40 : i32
    %116 = arith.truncf %108 : vector<1x256xf32> to vector<1x256xbf16>
    %cst_42 = arith.constant dense<0.000000e+00> : vector<1x768xf32>
    %117 = tpu.matmul %116, %8, %cst_42 {dimension_numbers = #tpu.dot_dimension_numbers<[1], [0], [0], [1], [0, 0, 1, 1], [], []>} : vector<1x256xbf16>, vector<256x768xbf16>, vector<1x768xf32> -> vector<1x768xf32>
    %118 = arith.addf %117, %9 : vector<1x768xf32>
    %119 = arith.index_cast %c2_i32_40 : i32 to index
    %c0_43 = arith.constant 0 : index
    %120 = vector.load %arg8[%119, %c0_43] : memref<3x768xf32, #tpu.memory_space<vmem>>, vector<1x128xf32>
    %121 = arith.index_cast %115 : i32 to index
    %c128_44 = arith.constant 128 : index
    %122 = vector.load %arg8[%121, %c128_44] : memref<3x768xf32, #tpu.memory_space<vmem>>, vector<1x128xf32>
    %123 = tpu.concatenate %120, %122 in 1 : vector<1x128xf32>, vector<1x128xf32> -> vector<1x256xf32>
    %124 = arith.index_cast %c2_i32_40 : i32 to index
    %c256_45 = arith.constant 256 : index
    %125 = vector.load %arg8[%124, %c256_45] : memref<3x768xf32, #tpu.memory_space<vmem>>, vector<1x128xf32>
    %126 = arith.index_cast %115 : i32 to index
    %c384_46 = arith.constant 384 : index
    %127 = vector.load %arg8[%126, %c384_46] : memref<3x768xf32, #tpu.memory_space<vmem>>, vector<1x128xf32>
    %128 = tpu.concatenate %125, %127 in 1 : vector<1x128xf32>, vector<1x128xf32> -> vector<1x256xf32>
    %129 = arith.index_cast %c2_i32_40 : i32 to index
    %c512_47 = arith.constant 512 : index
    %130 = vector.load %arg8[%129, %c512_47] : memref<3x768xf32, #tpu.memory_space<vmem>>, vector<1x128xf32>
    %131 = arith.index_cast %115 : i32 to index
    %c640_48 = arith.constant 640 : index
    %132 = vector.load %arg8[%131, %c640_48] : memref<3x768xf32, #tpu.memory_space<vmem>>, vector<1x128xf32>
    %133 = tpu.concatenate %130, %132 in 1 : vector<1x128xf32>, vector<1x128xf32> -> vector<1x256xf32>
    %134 = vector.extract_strided_slice %118 {offsets = [0, 0], sizes = [1, 256], strides = [1, 1]} : vector<1x768xf32> to vector<1x256xf32>
    %135 = arith.addf %123, %134 : vector<1x256xf32>
    %cst_49 = arith.constant 0.000000e+00 : f32
    %136 = vector.broadcast %cst_49 : f32 to vector<1x256xf32>
    %137 = arith.subf %136, %135 : vector<1x256xf32>
    %138 = math.exp %137 : vector<1x256xf32>
    %cst_50 = arith.constant 1.000000e+00 : f32
    %139 = vector.broadcast %cst_50 : f32 to vector<1x256xf32>
    %140 = arith.addf %139, %138 : vector<1x256xf32>
    %cst_51 = arith.constant 1.000000e+00 : f32
    %141 = vector.broadcast %cst_51 : f32 to vector<1x256xf32>
    %142 = arith.divf %141, %140 : vector<1x256xf32>
    %143 = vector.extract_strided_slice %118 {offsets = [0, 256], sizes = [1, 256], strides = [1, 1]} : vector<1x768xf32> to vector<1x256xf32>
    %144 = arith.addf %128, %143 : vector<1x256xf32>
    %cst_52 = arith.constant 0.000000e+00 : f32
    %145 = vector.broadcast %cst_52 : f32 to vector<1x256xf32>
    %146 = arith.subf %145, %144 : vector<1x256xf32>
    %147 = math.exp %146 : vector<1x256xf32>
    %cst_53 = arith.constant 1.000000e+00 : f32
    %148 = vector.broadcast %cst_53 : f32 to vector<1x256xf32>
    %149 = arith.addf %148, %147 : vector<1x256xf32>
    %cst_54 = arith.constant 1.000000e+00 : f32
    %150 = vector.broadcast %cst_54 : f32 to vector<1x256xf32>
    %151 = arith.divf %150, %149 : vector<1x256xf32>
    %152 = vector.extract_strided_slice %118 {offsets = [0, 512], sizes = [1, 256], strides = [1, 1]} : vector<1x768xf32> to vector<1x256xf32>
    %153 = arith.mulf %142, %152 : vector<1x256xf32>
    %154 = arith.addf %133, %153 : vector<1x256xf32>
    %155 = math.tanh %154 : vector<1x256xf32>
    %cst_55 = arith.constant 1.000000e+00 : f32
    %156 = vector.broadcast %cst_55 : f32 to vector<1x256xf32>
    %157 = arith.subf %156, %151 : vector<1x256xf32>
    %158 = arith.mulf %157, %155 : vector<1x256xf32>
    %159 = arith.mulf %151, %108 : vector<1x256xf32>
    %160 = arith.addf %158, %159 : vector<1x256xf32>
    %161 = vector.extract_strided_slice %160 {offsets = [0, 0], sizes = [1, 128], strides = [1, 1]} : vector<1x256xf32> to vector<1x128xf32>
    %162 = arith.index_cast %c2_i32_40 : i32 to index
    %c0_56 = arith.constant 0 : index
    %163 = vector.load %arg9[%162, %c0_56] : memref<3x256xf32, #tpu.memory_space<vmem>>, vector<1x128xf32>
    tpu.vector_store %arg9[%162, %c0_56], %161 {strides = array<i32>} : memref<3x256xf32, #tpu.memory_space<vmem>>, vector<1x128xf32>,
    %164 = vector.extract_strided_slice %160 {offsets = [0, 128], sizes = [1, 128], strides = [1, 1]} : vector<1x256xf32> to vector<1x128xf32>
    %165 = arith.index_cast %115 : i32 to index
    %c128_57 = arith.constant 128 : index
    %166 = vector.load %arg9[%165, %c128_57] : memref<3x256xf32, #tpu.memory_space<vmem>>, vector<1x128xf32>
    tpu.vector_store %arg9[%165, %c128_57], %164 {strides = array<i32>} : memref<3x256xf32, #tpu.memory_space<vmem>>, vector<1x128xf32>,
    %c3_i32 = arith.constant 3 : i32
    %c0_58 = arith.constant 0 : index
    %c0_59 = arith.constant 0 : index
    %167 = vector.load %arg9[%c0_58, %c0_59] : memref<3x256xf32, #tpu.memory_space<vmem>>, vector<3x256xf32>
    %cst_60 = arith.constant dense<0.000000e+00> : vector<3xf32>
    %168 = vector.multi_reduction <add>, %167, %cst_60 [1] : vector<3x256xf32> to vector<3xf32>
    %169 = vector.shape_cast %168 : vector<3xf32> to vector<3x1xf32>
    %cst_61 = arith.constant 2.560000e+02 : f32
    %170 = vector.broadcast %cst_61 : f32 to vector<3x1xf32>
    %171 = arith.divf %169, %170 : vector<3x1xf32>
    %172 = vector.broadcast %171 : vector<3x1xf32> to vector<3x256xf32>
    %173 = arith.subf %167, %172 : vector<3x256xf32>
    %174 = arith.mulf %173, %173 : vector<3x256xf32>
    %cst_62 = arith.constant dense<0.000000e+00> : vector<3xf32>
    %175 = vector.multi_reduction <add>, %174, %cst_62 [1] : vector<3x256xf32> to vector<3xf32>
    %176 = vector.shape_cast %175 : vector<3xf32> to vector<3x1xf32>
    %cst_63 = arith.constant 2.560000e+02 : f32
    %177 = vector.broadcast %cst_63 : f32 to vector<3x1xf32>
    %178 = arith.divf %176, %177 : vector<3x1xf32>
    %179 = vector.broadcast %171 : vector<3x1xf32> to vector<3x256xf32>
    %180 = arith.subf %167, %179 : vector<3x256xf32>
    %cst_64 = arith.constant 9.99999974E-6 : f32
    %181 = vector.broadcast %cst_64 : f32 to vector<3x1xf32>
    %182 = arith.addf %178, %181 : vector<3x1xf32>
    %183 = math.rsqrt %182 : vector<3x1xf32>
    %184 = vector.broadcast %183 : vector<3x1xf32> to vector<3x256xf32>
    %185 = arith.mulf %180, %184 : vector<3x256xf32>
    %c0_65 = arith.constant 0 : index
    %c0_66 = arith.constant 0 : index
    %186 = vector.load %arg5[%c0_65, %c0_66] : memref<1x256xf32, #tpu.memory_space<vmem>>, vector<1x256xf32>
    %187 = vector.broadcast %186 : vector<1x256xf32> to vector<3x256xf32>
    %188 = arith.mulf %185, %187 : vector<3x256xf32>
    %c0_67 = arith.constant 0 : index
    %c0_68 = arith.constant 0 : index
    %189 = vector.load %arg6[%c0_67, %c0_68] : memref<1x256xf32, #tpu.memory_space<vmem>>, vector<1x256xf32>
    %190 = vector.broadcast %189 : vector<1x256xf32> to vector<3x256xf32>
    %191 = arith.addf %188, %190 : vector<3x256xf32>
    %cst_69 = arith.constant 0.000000e+00 : f32
    %192 = vector.broadcast %cst_69 : f32 to vector<3x256xf32>
    %193 = arith.maximumf %191, %192 : vector<3x256xf32>
    %c0_70 = arith.constant 0 : index
    %c0_71 = arith.constant 0 : index
    %194 = vector.load %arg7[%c0_70, %c0_71] : memref<3x256xf32, #tpu.memory_space<vmem>>, vector<3x256xf32>
    tpu.vector_store %arg7[%c0_70, %c0_71], %193 {strides = array<i32>} : memref<3x256xf32, #tpu.memory_space<vmem>>, vector<3x256xf32>,
    return
  }
}

</mosaic_0001>

<bundles_post_ra>
// kernel: tpu_custom_call.1
= control target key start
LH: loop header
LB: loop body
LE: loop exit
PB: predicated region body
PF: predicated region fallthrough
CT: control target
= control target key end

     0   :  { %12 = vsyncpa [#allocation5], 0  ;;  %s2769_s0 = inlined_call_operand.hbm [shape: f32[3,64], index: 0, kind: input, shape index: {}]   ;;  %s2770_s1 = inlined_call_operand.hbm [shape: bf16[64,768], index: 1, kind: input, shape index: {}]   ;;  %s2771_s2 = inlined_call_operand.vmem [shape: f32[1,768], index: 2, kind: input, shape index: {}]   ;;  %s2772_s3 = inlined_call_operand.hbm [shape: bf16[256,768], index: 3, kind: input, shape index: {}]   ;;  %s2773_s4 = inlined_call_operand.vmem [shape: f32[1,768], index: 4, kind: input, shape index: {}]   ;;  %s2774_s5 = inlined_call_operand.vmem [shape: f32[1,256], index: 5, kind: input, shape index: {}]   ;;  %s2775_s6 = inlined_call_operand.vmem [shape: f32[1,256], index: 6, kind: input, shape index: {}]   ;;  %s2776_s7 = inlined_call_operand.hbm [shape: f32[3,256], index: 7, kind: output, shape index: {}]  }
   0x1   :  { %13 = vsyncpa [#allocation8], 0 }
   0x2   :  { %14 = vsyncpa [#allocation6], 0  ;;  %s2084_s24 = smov [#allocation7]   ;;  %s1990_s28 = scalar_lea.hbm %s2770_s1, 3072 }
   0x3   :  { %s30_s25 = sshll.u32 %s2084_s24, 4  ;;  %p1991_p0 = scmp.ne.s32.totalorder %s2770_s1, %s1990_s28  ;;  %s31_s25 = int_to_ptr.vmem [resolvable:$true] %s30_s25 }
   0x4   :  { %p1994_p1 = scmp.lt.u32.totalorder %s1990_s28, %s2770_s1 }
   0x6   :  { %p1996_p2 = pnand %p1994_p1, %p1991_p0 }
   0x8   :  { %1999 = shalt.err (!%p1996_p2)
}
   0x9   :  { %s2000_s10 = scalar_lea.vmem %s31_s25, 3072  ;;  %p2005_p4 = scmp.lt.s32.totalorder %s31_s25, %s31_s25 }
   0xa   :  { %p2001_p3 = scmp.ne.s32.totalorder %s31_s25, %s2000_s10  ;;  %p2006_p5 = scmp.lt.s32.totalorder %s2000_s10, %s2000_s10 }
   0xc   :  { %p2007_p6 = por %p2006_p5, %p2005_p4 }
   0xe   :  { %p2008_p7 = pnand %p2007_p6, %p2001_p3 }
  0x10   :  { %2011 = shalt.err (!%p2008_p7)
}
  0x11   :  { %s2085_s11 = smov 384   ;;  %s2086_s12 = smov 24  }
  0x12   :  { %36 = dma.hbm_to_vmem [thread:$0]  %s2770_s1, 3072, %s31_s25, [#allocation8], %s2085_s11, %s2085_s11, %s2086_s12  }
  0x13   :  { %s2087_s15 = smov [#allocation4]   ;;  %s2088_s17 = smov [#allocation9]  }
  0x14   :  { %s21_s16 = sshll.u32 %s2087_s15, 4  ;;  %s44_s18 = sshll.u32 %s2088_s17, 4  ;;  %s22_s16 = int_to_ptr.vmem [resolvable:$true] %s21_s16  ;;  %s45_s18 = int_to_ptr.vmem [resolvable:$true] %s44_s18 }
  0x15   :  { %s2012_s21 = scalar_lea.hbm %s2769_s0, 64 }
  0x16   :  { %p2013_p8 = scmp.ne.s32.totalorder %s2769_s0, %s2012_s21  ;;  %p2016_p9 = scmp.lt.u32.totalorder %s2012_s21, %s2769_s0 }
  0x18   :  { %p2018_p10 = pnand %p2016_p9, %p2013_p8 }
  0x1a   :  { %2021 = shalt.err (!%p2018_p10)
}
  0x1b   :  { %s2022_s1 = scalar_lea.vmem %s22_s16, 64  ;;  %p2027_p12 = scmp.lt.s32.totalorder %s22_s16, %s22_s16 }
  0x1c   :  { %p2023_p11 = scmp.ne.s32.totalorder %s22_s16, %s2022_s1  ;;  %p2028_p13 = scmp.lt.s32.totalorder %s2022_s1, %s2022_s1 }
  0x1e   :  { %p2029_p0 = por %p2028_p13, %p2027_p12 }
  0x20   :  { %p2030_p1 = pnand %p2029_p0, %p2023_p11 }
  0x22   :  { %2033 = shalt.err (!%p2030_p1)
}
  0x23   :  { %24 = dma.hbm_to_vmem [thread:$0]  %s2769_s0, 64, %s22_s16, [#allocation5]  }
  0x24   :  { %s2034_s30 = scalar_lea.hbm %s2772_s3, 12288 }
  0x25   :  { %p2035_p2 = scmp.ne.s32.totalorder %s2772_s3, %s2034_s30  ;;  %p2038_p3 = scmp.lt.u32.totalorder %s2034_s30, %s2772_s3 }
  0x27   :  { %p2040_p4 = pnand %p2038_p3, %p2035_p2 }
  0x29   :  { %2043 = shalt.err (!%p2040_p4)
}
  0x2a   :  { %s2044_s14 = scalar_lea.vmem %s45_s18, 12288  ;;  %p2049_p6 = scmp.lt.s32.totalorder %s45_s18, %s45_s18 }
  0x2b   :  { %p2045_p5 = scmp.ne.s32.totalorder %s45_s18, %s2044_s14  ;;  %p2050_p7 = scmp.lt.s32.totalorder %s2044_s14, %s2044_s14 }
  0x2d   :  { %p2051_p8 = por %p2050_p7, %p2049_p6 }
  0x2f   :  { %p2052_p9 = pnand %p2051_p8, %p2045_p5 }
  0x31   :  { %2055 = shalt.err (!%p2052_p9)
}
  0x32   :  { %50 = dma.hbm_to_vmem [thread:$0]  %s2772_s3, 12288, %s45_s18, [#allocation8], %s2085_s11, %s2085_s11, %s2086_s12  }
  0x33   :  { %2078 = dma.done.wait [#allocation5], 64  }
  0x34   :  { %2079 = vsyncadd [#allocation5], 4294967232 }
  0x35   :  { %2080 = dma.done.wait [#allocation8], 15360  }
  0x36   :  { %2081 = vsyncadd [#allocation8], 4294951936  ;;  %v2777_v0 = vmov 0   ;;  %v1737_v1 = vld [vmem:[#allocation7 + $0x4] ss:$24 sps:$4 sm:$0xff]   ;;  %vm245_vm0 = vcmask 523264  }
  0x37   :  { %281 = vmatprep.mubr.bf16.mxu0 %v2777_v0  ;;  %1027 = vmatprep.mubr.bf16.mxu1 %v2777_v0  ;;  %v2176_v2 = vld [vmem:[#allocation9 + $0x4] ss:$24 sps:$4 sm:$0xff]   ;;  %v1741_v3 = vld [vmem:[#allocation7] ss:$24 sps:$4 sm:$0xff]   ;;  %v1743_v5 = vld [vmem:[#allocation7 + $0x34] ss:$24 sps:$4 sm:$0xff]  }
  0x38   :  { %249 = vmatprep.subr.bf16.mxu0 %v1737_v1  ;;  %v2178_v4 = vld [vmem:[#allocation9] ss:$24 sps:$4 sm:$0xff]   ;;  %995 = vmatprep.subr.bf16.mxu1 %v2176_v2  ;;  %v2182_v6 = vld [vmem:[#allocation9 + $0x34] ss:$24 sps:$4 sm:$0xff]   ;;  %v1747_v7 = vld [vmem:[#allocation7 + $0x30] ss:$24 sps:$4 sm:$0xff]  }
  0x39   :  { %250 = vmatpush1.bf16.msra.mxu0 %v1741_v3  ;;  %996 = vmatpush1.bf16.msra.mxu1 %v2178_v4  ;;  %v2184_v8 = vld [vmem:[#allocation9 + $0x30] ss:$24 sps:$4 sm:$0xff]   ;;  %v1749_v9 = vld [vmem:[#allocation7 + $0x64] ss:$24 sps:$4 sm:$0xff]   ;;  %v1753_v11 = vld [vmem:[#allocation7 + $0x60] ss:$24 sps:$4 sm:$0xff]  }
  0x3a   :  { %251 = vmatprep.subr.bf16.mxu0 %v1743_v5  ;;  %997 = vmatprep.subr.bf16.mxu1 %v2182_v6  ;;  %v2187_v10 = vld [vmem:[#allocation9 + $0x64] ss:$24 sps:$4 sm:$0xff]   ;;  %v2189_v12 = vld [vmem:[#allocation9 + $0x60] ss:$24 sps:$4 sm:$0xff]   ;;  %v1755_v13 = vld [vmem:[#allocation7 + $0x94] ss:$24 sps:$4 sm:$0xff]  }
  0x3b   :  { %v2193_v14 = vld [vmem:[#allocation9 + $0x94] ss:$24 sps:$4 sm:$0xff]   ;;  %v1759_v15 = vld [vmem:[#allocation7 + $0x90] ss:$24 sps:$4 sm:$0xff]   ;;  %v67_v17 = vld [vmem:[#allocation4] sm:$0x7] }
  0x3c   :  { %v2195_v16 = vld [vmem:[#allocation9 + $0x90] ss:$24 sps:$4 sm:$0xff]   ;;  %v1763_v18 = vld [vmem:[#allocation7 + $0xc] ss:$24 sps:$4 sm:$0xff]   ;;  %v2201_v20 = vpack.c.bf16 %v67_v17, %v67_v17  ;;  %v2204_v22 = vld [vmem:[#allocation9 + $0xc0] ss:$24 sps:$4 sm:$0xff]  }
  0x3d   :  { %252 = vmatpush1.bf16.msra.mxu0 %v1747_v7  ;;  %998 = vmatpush1.bf16.msra.mxu1 %v2184_v8  ;;  %v2199_v19 = vld [vmem:[#allocation9 + $0xc4] ss:$24 sps:$4 sm:$0xff]   ;;  %v1761_v21 = vld [vmem:[#allocation7 + $0x8] ss:$24 sps:$4 sm:$0xff]   ;;  %v2207_v24 = vld [vmem:[#allocation9 + $0xf4] ss:$24 sps:$4 sm:$0xff]  }
  0x3e   :  { %253 = vmatprep.subr.bf16.mxu0 %v1749_v9  ;;  %999 = vmatprep.subr.bf16.mxu1 %v2187_v10  ;;  %v1769_v23 = vld [vmem:[#allocation7 + $0x3c] ss:$24 sps:$4 sm:$0xff]   ;;  %v1767_v25 = vld [vmem:[#allocation7 + $0x38] ss:$24 sps:$4 sm:$0xff]   ;;  %v1775_v27 = vld [vmem:[#allocation7 + $0x6c] ss:$24 sps:$4 sm:$0xff]  }
  0x3f   :  { %v2212_v26 = vld [vmem:[#allocation9 + $0xf0] ss:$24 sps:$4 sm:$0xff]   ;;  %v2215_v28 = vld [vmem:[#allocation9 + $0x124] ss:$24 sps:$4 sm:$0xff]   ;;  %v2219_v30 = vld [vmem:[#allocation9 + $0x120] ss:$24 sps:$4 sm:$0xff]  }
  0x40   :  { %v1773_v29 = vld [vmem:[#allocation7 + $0x68] ss:$24 sps:$4 sm:$0xff]   ;;  %v1781_v31 = vld [vmem:[#allocation7 + $0x9c] ss:$24 sps:$4 sm:$0xff]   ;;  %v1779_v33 = vld [vmem:[#allocation7 + $0x98] ss:$24 sps:$4 sm:$0xff]  }
  0x41   :  { %254 = vmatpush1.bf16.msra.mxu0 %v1753_v11  ;;  %1000 = vmatpush1.bf16.msra.mxu1 %v2189_v12  ;;  %v2222_v32 = vld [vmem:[#allocation9 + $0x154] ss:$24 sps:$4 sm:$0xff]   ;;  %v2225_v34 = vld [vmem:[#allocation9 + $0x150] ss:$24 sps:$4 sm:$0xff]   ;;  %v2228_v36 = vld [vmem:[#allocation9 + $0x184] ss:$24 sps:$4 sm:$0xff]  }
  0x42   :  { %255 = vmatprep.subr.bf16.mxu0 %v1755_v13  ;;  %1001 = vmatprep.subr.bf16.mxu1 %v2193_v14  ;;  %v1787_v35 = vld [vmem:[#allocation7 + $0x14] ss:$24 sps:$4 sm:$0xff]   ;;  %v1785_v37 = vld [vmem:[#allocation7 + $0x10] ss:$24 sps:$4 sm:$0xff]   ;;  %v2230_v38 = vld [vmem:[#allocation9 + $0x180] ss:$24 sps:$4 sm:$0xff]  }
  0x43   :  { %v1793_v39 = vld [vmem:[#allocation7 + $0x44] ss:$24 sps:$4 sm:$0xff]   ;;  %v2234_v40 = vld [vmem:[#allocation9 + $0x1b4] ss:$24 sps:$4 sm:$0xff]   ;;  %v1791_v41 = vld [vmem:[#allocation7 + $0x40] ss:$24 sps:$4 sm:$0xff]  }
  0x44   :  { %v2239_v42 = vld [vmem:[#allocation9 + $0x1b0] ss:$24 sps:$4 sm:$0xff]   ;;  %v1799_v43 = vld [vmem:[#allocation7 + $0x74] ss:$24 sps:$4 sm:$0xff]   ;;  %v2242_v44 = vld [vmem:[#allocation9 + $0x1e4] ss:$24 sps:$4 sm:$0xff]  }
  0x45   :  { %256 = vmatpush1.bf16.msra.mxu0 %v1759_v15  ;;  %1002 = vmatpush1.bf16.msra.mxu1 %v2195_v16  ;;  %v1797_v45 = vld [vmem:[#allocation7 + $0x70] ss:$24 sps:$4 sm:$0xff]   ;;  %v2245_v46 = vld [vmem:[#allocation9 + $0x1e0] ss:$24 sps:$4 sm:$0xff]   ;;  %v1805_v47 = vld [vmem:[#allocation7 + $0xa4] ss:$24 sps:$4 sm:$0xff]  }
  0x46   :  { %290 = vmatprep.subr.bf16.mxu0 %v1763_v18  ;;  %1003 = vmatprep.subr.bf16.mxu1 %v2199_v19  ;;  %v2249_v48 = vld [vmem:[#allocation9 + $0x214] ss:$24 sps:$4 sm:$0xff]   ;;  %v1803_v49 = vld [vmem:[#allocation7 + $0xa0] ss:$24 sps:$4 sm:$0xff]   ;;  %v2252_v50 = vld [vmem:[#allocation9 + $0x210] ss:$24 sps:$4 sm:$0xff]  }
  0x47   :  { %v2255_v51 = vld [vmem:[#allocation9 + $0x244] ss:$24 sps:$4 sm:$0xff]   ;;  %v2259_v53 = vld [vmem:[#allocation9 + $0x8] ss:$24 sps:$4 sm:$0xff]   ;;  %v2266_v55 = vld [vmem:[#allocation9 + $0x274] ss:$24 sps:$4 sm:$0xff]  }
  0x48   :  { %1630 = vmatmul.mubr.msk.bf16.vlgmr.msra.gmra.mrb[0].mxu0 %vm245_vm0, %v2201_v20  ;;  %v2257_v52 = vld [vmem:[#allocation9 + $0xc] ss:$24 sps:$4 sm:$0xff]   ;;  %v2262_v54 = vld [vmem:[#allocation9 + $0x240] ss:$24 sps:$4 sm:$0xff]   ;;  %v2268_v56 = vld [vmem:[#allocation9 + $0x3c] ss:$24 sps:$4 sm:$0xff]  }
  0x49   :  { %291 = vmatpush1.bf16.msra.mxu0 %v1761_v21  ;;  %1004 = vmatpush1.bf16.msra.mxu1 %v2204_v22  ;;  %v2272_v57 = vld [vmem:[#allocation9 + $0x38] ss:$24 sps:$4 sm:$0xff]   ;;  %v2280_v59 = vld [vmem:[#allocation9 + $0x2a4] ss:$24 sps:$4 sm:$0xff]   ;;  %v2285_v61 = vld [vmem:[#allocation9 + $0x68] ss:$24 sps:$4 sm:$0xff]  }
  0x4a   :  { %292 = vmatprep.subr.bf16.mxu0 %v1769_v23  ;;  %1005 = vmatprep.subr.bf16.mxu1 %v2207_v24  ;;  %v2276_v58 = vld [vmem:[#allocation9 + $0x270] ss:$24 sps:$4 sm:$0xff]   ;;  %v2282_v60 = vld [vmem:[#allocation9 + $0x6c] ss:$24 sps:$4 sm:$0xff]   ;;  %v2289_v62 = vld [vmem:[#allocation9 + $0x2a0] ss:$24 sps:$4 sm:$0xff]  }
  0x4b   :  { %322 = vmatprep.mubr.bf16.mxu0 %v2777_v0  ;;  %v2293_v63 = vld [vmem:[#allocation9 + $0x2d4] ss:$24 sps:$4 sm:$0xff]   ;;  %v2297_v3 = vld [vmem:[#allocation9 + $0x98] ss:$24 sps:$4 sm:$0xff]   ;;  %v2309_v11 = vld [vmem:[#allocation9 + $0xc8] ss:$24 sps:$4 sm:$0xff]  }
  0x4c   :  { %v2295_v1 = vld [vmem:[#allocation9 + $0x9c] ss:$24 sps:$4 sm:$0xff]   ;;  %v2301_v5 = vld [vmem:[#allocation9 + $0x2d0] ss:$24 sps:$4 sm:$0xff]   ;;  %v2305_v7 = vld [vmem:[#allocation9 + $0xcc] ss:$24 sps:$4 sm:$0xff]  }
  0x4d   :  { %293 = vmatpush1.bf16.msra.mxu0 %v1767_v25  ;;  %1006 = vmatpush1.bf16.msra.mxu1 %v2212_v26  ;;  %2869 = vst [vmem:[#allocation14_spill] sm:$0xff] %v2301_v5  ;;  %v2307_v9 = vld [vmem:[#allocation9 + $0x14] ss:$24 sps:$4 sm:$0xff]   ;;  %2871 = vst [vmem:[#allocation16_spill] sm:$0xff] %v2309_v11  ;;  %v2313_v13 = vld [vmem:[#allocation9 + $0x10] ss:$24 sps:$4 sm:$0xff]  }
  0x4e   :  { %294 = vmatprep.subr.bf16.mxu0 %v1775_v27  ;;  %1007 = vmatprep.subr.bf16.mxu1 %v2215_v28  ;;  %2870 = vst [vmem:[#allocation15_spill] sm:$0xff] %v2307_v9  ;;  %2872 = vst [vmem:[#allocation17_spill] sm:$0xff] %v2313_v13  ;;  %v2317_v15 = vld [vmem:[#allocation9 + $0xfc] ss:$24 sps:$4 sm:$0xff]   ;;  %v2322_v18 = vld [vmem:[#allocation9 + $0xf8] ss:$24 sps:$4 sm:$0xff]  }
  0x4f   :  { %2873 = vst [vmem:[#allocation18_spill] sm:$0xff] %v2317_v15  ;;  %v2319_v17 = vld [vmem:[#allocation9 + $0x44] ss:$24 sps:$4 sm:$0xff]   ;;  %2875 = vst [vmem:[#allocation20_spill] sm:$0xff] %v2322_v18  ;;  %v2332_v23 = vld [vmem:[#allocation9 + $0x74] ss:$24 sps:$4 sm:$0xff]  }
  0x50   :  { %2874 = vst [vmem:[#allocation19_spill] sm:$0xff] %v2319_v17  ;;  %v2330_v21 = vld [vmem:[#allocation9 + $0x12c] ss:$24 sps:$4 sm:$0xff]   ;;  %2878 = vst [vmem:[#allocation23_spill] sm:$0xff] %v2332_v23  ;;  %v2335_v25 = vld [vmem:[#allocation9 + $0x128] ss:$24 sps:$4 sm:$0xff]  }
  0x51   :  { %295 = vmatpush1.bf16.msra.mxu0 %v1773_v29  ;;  %1008 = vmatpush1.bf16.msra.mxu1 %v2219_v30  ;;  %2877 = vst [vmem:[#allocation22_spill] sm:$0xff] %v2330_v21  ;;  %2879 = vst [vmem:[#allocation24_spill] sm:$0xff] %v2335_v25  ;;  %v2339_v27 = vld [vmem:[#allocation9 + $0x70] ss:$24 sps:$4 sm:$0xff]   ;;  %v2343_v29 = vld [vmem:[#allocation9 + $0x15c] ss:$24 sps:$4 sm:$0xff]  }
  0x52   :  { %296 = vmatprep.subr.bf16.mxu0 %v1781_v31  ;;  %1009 = vmatprep.subr.bf16.mxu1 %v2222_v32  ;;  %2880 = vst [vmem:[#allocation25_spill] sm:$0xff] %v2339_v27  ;;  %2881 = vst [vmem:[#allocation26_spill] sm:$0xff] %v2343_v29  ;;  %v2345_v31 = vld [vmem:[#allocation9 + $0xa4] ss:$24 sps:$4 sm:$0xff]   ;;  %vm1522_vm1 = vcmask 1042432   ;;  %s2091_s19 = smov [#allocation10]  }
  0x53   :  { %2882 = vst [vmem:[#allocation27_spill] sm:$0xff] %v2345_v31 }
  0x55   :  { %297 = vmatpush1.bf16.msra.mxu0 %v1779_v33  ;;  %1010 = vmatpush1.bf16.msra.mxu1 %v2225_v34  ;;  %v2347_v33 = vld [vmem:[#allocation9 + $0x158] ss:$24 sps:$4 sm:$0xff]  }
  0x56   :  { %331 = vmatprep.subr.bf16.mxu0 %v1787_v35  ;;  %1011 = vmatprep.subr.bf16.mxu1 %v2228_v36  ;;  %2883 = vst [vmem:[#allocation28_spill] sm:$0xff] %v2347_v33  ;;  %v2351_v35 = vld [vmem:[#allocation9 + $0xa0] ss:$24 sps:$4 sm:$0xff]  }
  0x57   :  { %2884 = vst [vmem:[#allocation29_spill] sm:$0xff] %v2351_v35 }
  0x58   :  { %1631 = vmatmul.mubr.msk.bf16.vlgmr.msra.gmra.mrb[4].mxu0 %vm245_vm0, %v2201_v20 }
  0x59   :  { %332 = vmatpush1.bf16.msra.mxu0 %v1785_v37  ;;  %1012 = vmatpush1.bf16.msra.mxu1 %v2230_v38  ;;  %v2355_v37 = vld [vmem:[#allocation9 + $0x18c] ss:$24 sps:$4 sm:$0xff]  }
  0x5a   :  { %333 = vmatprep.subr.bf16.mxu0 %v1793_v39  ;;  %1013 = vmatprep.subr.bf16.mxu1 %v2234_v40  ;;  %2885 = vst [vmem:[#allocation30_spill] sm:$0xff] %v2355_v37  ;;  %v2357_v39 = vld [vmem:[#allocation9 + $0xd4] ss:$24 sps:$4 sm:$0xff]  }
  0x5b   :  { %363 = vmatprep.mubr.bf16.mxu0 %v2777_v0  ;;  %2886 = vst [vmem:[#allocation31_spill] sm:$0xff] %v2357_v39 }
  0x5d   :  { %334 = vmatpush1.bf16.msra.mxu0 %v1791_v41  ;;  %1014 = vmatpush1.bf16.msra.mxu1 %v2239_v42  ;;  %v2361_v41 = vld [vmem:[#allocation9 + $0x188] ss:$24 sps:$4 sm:$0xff]  }
  0x5e   :  { %335 = vmatprep.subr.bf16.mxu0 %v1799_v43  ;;  %1015 = vmatprep.subr.bf16.mxu1 %v2242_v44  ;;  %2887 = vst [vmem:[#allocation32_spill] sm:$0xff] %v2361_v41  ;;  %v2363_v43 = vld [vmem:[#allocation9 + $0xd0] ss:$24 sps:$4 sm:$0xff]  }
  0x5f   :  { %2888 = vst [vmem:[#allocation33_spill] sm:$0xff] %v2363_v43 }
  0x61   :  { %336 = vmatpush1.bf16.msra.mxu0 %v1797_v45  ;;  %1016 = vmatpush1.bf16.msra.mxu1 %v2245_v46  ;;  %v2367_v45 = vld [vmem:[#allocation9 + $0x1bc] ss:$24 sps:$4 sm:$0xff]  }
  0x62   :  { %337 = vmatprep.subr.bf16.mxu0 %v1805_v47  ;;  %1017 = vmatprep.subr.bf16.mxu1 %v2249_v48  ;;  %2889 = vst [vmem:[#allocation34_spill] sm:$0xff] %v2367_v45  ;;  %v2369_v47 = vld [vmem:[#allocation9 + $0x104] ss:$24 sps:$4 sm:$0xff]  }
  0x63   :  { %2890 = vst [vmem:[#allocation35_spill] sm:$0xff] %v2369_v47 }
  0x65   :  { %338 = vmatpush1.bf16.msra.mxu0 %v1803_v49  ;;  %1018 = vmatpush1.bf16.msra.mxu1 %v2252_v50  ;;  %v2373_v49 = vld [vmem:[#allocation9 + $0x1b8] ss:$24 sps:$4 sm:$0xff]  }
  0x66   :  { %1019 = vmatprep.subr.bf16.mxu1 %v2255_v51  ;;  %1036 = vmatprep.subr.bf16.mxu0 %v2257_v52  ;;  %2891 = vst [vmem:[#allocation36_spill] sm:$0xff] %v2373_v49 }
  0x68   :  { %1632 = vmatmul.mubr.msk.bf16.vlgmr.msra.gmra.mrb[8].mxu0 %vm245_vm0, %v2201_v20  ;;  %v2326_v20 = vld [vmem:[#allocation9 + $0x40] ss:$24 sps:$4 sm:$0xff]  }
  0x69   :  { %1020 = vmatpush1.bf16.msra.mxu1 %v2262_v54  ;;  %1037 = vmatpush1.bf16.msra.mxu0 %v2259_v53  ;;  %2876 = vst [vmem:[#allocation21_spill] sm:$0xff] %v2326_v20 }
  0x6a   :  { %1021 = vmatprep.subr.bf16.mxu1 %v2266_v55  ;;  %1038 = vmatprep.subr.bf16.mxu0 %v2268_v56 }
  0x6b   :  { %1068 = vmatprep.mubr.bf16.mxu0 %v2777_v0 }
  0x6d   :  { %1022 = vmatpush1.bf16.msra.mxu1 %v2276_v58  ;;  %1039 = vmatpush1.bf16.msra.mxu0 %v2272_v57 }
  0x6e   :  { %1023 = vmatprep.subr.bf16.mxu1 %v2280_v59  ;;  %1040 = vmatprep.subr.bf16.mxu0 %v2282_v60 }
  0x71   :  { %1024 = vmatpush1.bf16.msra.mxu1 %v2289_v62  ;;  %1041 = vmatpush1.bf16.msra.mxu0 %v2285_v61 }
  0x72   :  { %1025 = vmatprep.subr.bf16.mxu1 %v2293_v63  ;;  %1042 = vmatprep.subr.bf16.mxu0 %v2295_v1 }
  0x75   :  { %1026 = vmatpush1.bf16.msra.mxu1 %v2301_v5  ;;  %1043 = vmatpush1.bf16.msra.mxu0 %v2297_v3  ;;  %v2423_v5 = vld [vmem:[#allocation9 + $0x1c0] ss:$24 sps:$4 sm:$0xff]  }
  0x76   :  { %1044 = vmatprep.subr.bf16.mxu0 %v2305_v7  ;;  %1077 = vmatprep.subr.bf16.mxu1 %v2307_v9  ;;  %v2417_v9 = vld [vmem:[#allocation9 + $0x1c4] ss:$24 sps:$4 sm:$0xff]   ;;  %2908 = vst [vmem:[#allocation53_spill] sm:$0xff] %v2423_v5 }
  0x77   :  { %2906 = vst [vmem:[#allocation51_spill] sm:$0xff] %v2417_v9 }
  0x78   :  { %1028 = vmatmul.mubr.bf16.vlgmr.msra.gmra.mrb[0].mxu1 %v2777_v0 }
  0x79   :  { %1045 = vmatpush1.bf16.msra.mxu0 %v2309_v11  ;;  %1078 = vmatpush1.bf16.msra.mxu1 %v2313_v13  ;;  %v2411_v13 = vld [vmem:[#allocation9 + $0x190] ss:$24 sps:$4 sm:$0xff]  }
  0x7a   :  { %1046 = vmatprep.subr.bf16.mxu0 %v2317_v15  ;;  %1079 = vmatprep.subr.bf16.mxu1 %v2319_v17  ;;  %v2405_v17 = vld [vmem:[#allocation9 + $0x194] ss:$24 sps:$4 sm:$0xff]   ;;  %2904 = vst [vmem:[#allocation49_spill] sm:$0xff] %v2411_v13 }
  0x7b   :  { %1109 = vmatprep.mubr.bf16.mxu1 %v2777_v0  ;;  %v2375_v0 = vld [vmem:[#allocation9 + $0x100] ss:$24 sps:$4 sm:$0xff]   ;;  %2902 = vst [vmem:[#allocation47_spill] sm:$0xff] %v2405_v17 }
  0x7c   :  { %2892 = vst [vmem:[#allocation37_spill] sm:$0xff] %v2375_v0 }
  0x7d   :  { %1047 = vmatpush1.bf16.msra.mxu0 %v2322_v18  ;;  %1080 = vmatpush1.bf16.msra.mxu1 %v2326_v20  ;;  %v2399_v20 = vld [vmem:[#allocation9 + $0x160] ss:$24 sps:$4 sm:$0xff]  }
  0x7e   :  { %1048 = vmatprep.subr.bf16.mxu0 %v2330_v21  ;;  %1081 = vmatprep.subr.bf16.mxu1 %v2332_v23  ;;  %v2393_v23 = vld [vmem:[#allocation9 + $0x164] ss:$24 sps:$4 sm:$0xff]   ;;  %2900 = vst [vmem:[#allocation45_spill] sm:$0xff] %v2399_v20 }
  0x7f   :  { %2898 = vst [vmem:[#allocation43_spill] sm:$0xff] %v2393_v23 }
  0x81   :  { %1049 = vmatpush1.bf16.msra.mxu0 %v2335_v25  ;;  %1082 = vmatpush1.bf16.msra.mxu1 %v2339_v27  ;;  %v2387_v27 = vld [vmem:[#allocation9 + $0x130] ss:$24 sps:$4 sm:$0xff]  }
  0x82   :  { %1050 = vmatprep.subr.bf16.mxu0 %v2343_v29  ;;  %1083 = vmatprep.subr.bf16.mxu1 %v2345_v31  ;;  %v2381_v31 = vld [vmem:[#allocation9 + $0x134] ss:$24 sps:$4 sm:$0xff]   ;;  %2896 = vst [vmem:[#allocation41_spill] sm:$0xff] %v2387_v27 }
  0x83   :  { %2894 = vst [vmem:[#allocation39_spill] sm:$0xff] %v2381_v31 }
  0x85   :  { %1051 = vmatpush1.bf16.msra.mxu0 %v2347_v33  ;;  %1084 = vmatpush1.bf16.msra.mxu1 %v2351_v35  ;;  %v2379_v35 = vld [vmem:[#allocation9 + $0x1ec] ss:$24 sps:$4 sm:$0xff]  }
  0x86   :  { %1052 = vmatprep.subr.bf16.mxu0 %v2355_v37  ;;  %1085 = vmatprep.subr.bf16.mxu1 %v2357_v39  ;;  %2893 = vst [vmem:[#allocation38_spill] sm:$0xff] %v2379_v35  ;;  %v2385_v39 = vld [vmem:[#allocation9 + $0x1e8] ss:$24 sps:$4 sm:$0xff]  }
  0x87   :  { %2895 = vst [vmem:[#allocation40_spill] sm:$0xff] %v2385_v39 }
  0x89   :  { %1053 = vmatpush1.bf16.msra.mxu0 %v2361_v41  ;;  %1086 = vmatpush1.bf16.msra.mxu1 %v2363_v43  ;;  %v2391_v43 = vld [vmem:[#allocation9 + $0x21c] ss:$24 sps:$4 sm:$0xff]  }
  0x8a   :  { %1054 = vmatprep.subr.bf16.mxu0 %v2367_v45  ;;  %1087 = vmatprep.subr.bf16.mxu1 %v2369_v47  ;;  %2897 = vst [vmem:[#allocation42_spill] sm:$0xff] %v2391_v43  ;;  %v2397_v47 = vld [vmem:[#allocation9 + $0x218] ss:$24 sps:$4 sm:$0xff]  }
  0x8b   :  { %2899 = vst [vmem:[#allocation44_spill] sm:$0xff] %v2397_v47 }
  0x8d   :  { %1055 = vmatpush1.bf16.msra.mxu0 %v2373_v49  ;;  %1088 = vmatpush1.bf16.msra.mxu1 %v2375_v0  ;;  %v2403_v0 = vld [vmem:[#allocation9 + $0x24c] ss:$24 sps:$4 sm:$0xff]  }
  0x8e   :  { %1056 = vmatprep.subr.bf16.mxu0 %v2379_v35  ;;  %1089 = vmatprep.subr.bf16.mxu1 %v2381_v31  ;;  %2901 = vst [vmem:[#allocation46_spill] sm:$0xff] %v2403_v0  ;;  %v2409_v31 = vld [vmem:[#allocation9 + $0x248] ss:$24 sps:$4 sm:$0xff]  }
  0x8f   :  { %2903 = vst [vmem:[#allocation48_spill] sm:$0xff] %v2409_v31 }
  0x91   :  { %1057 = vmatpush1.bf16.msra.mxu0 %v2385_v39  ;;  %1090 = vmatpush1.bf16.msra.mxu1 %v2387_v27  ;;  %v2415_v27 = vld [vmem:[#allocation9 + $0x27c] ss:$24 sps:$4 sm:$0xff]  }
  0x92   :  { %1058 = vmatprep.subr.bf16.mxu0 %v2391_v43  ;;  %1091 = vmatprep.subr.bf16.mxu1 %v2393_v23  ;;  %2905 = vst [vmem:[#allocation50_spill] sm:$0xff] %v2415_v27  ;;  %v2421_v23 = vld [vmem:[#allocation9 + $0x278] ss:$24 sps:$4 sm:$0xff]  }
  0x93   :  { %2907 = vst [vmem:[#allocation52_spill] sm:$0xff] %v2421_v23 }
  0x95   :  { %1059 = vmatpush1.bf16.msra.mxu0 %v2397_v47  ;;  %1092 = vmatpush1.bf16.msra.mxu1 %v2399_v20  ;;  %v2427_v20 = vld [vmem:[#allocation9 + $0x2ac] ss:$24 sps:$4 sm:$0xff]  }
  0x96   :  { %1060 = vmatprep.subr.bf16.mxu0 %v2403_v0  ;;  %1093 = vmatprep.subr.bf16.mxu1 %v2405_v17  ;;  %2909 = vst [vmem:[#allocation54_spill] sm:$0xff] %v2427_v20  ;;  %v2429_v0 = vld [vmem:[#allocation9 + $0x1f4] ss:$24 sps:$4 sm:$0xff]   ;;  %v2433_v17 = vld [vmem:[#allocation9 + $0x2a8] ss:$24 sps:$4 sm:$0xff]  }
  0x97   :  { %2910 = vst [vmem:[#allocation55_spill] sm:$0xff] %v2429_v0  ;;  %2911 = vst [vmem:[#allocation56_spill] sm:$0xff] %v2433_v17 }
  0x99   :  { %1061 = vmatpush1.bf16.msra.mxu0 %v2409_v31  ;;  %1094 = vmatpush1.bf16.msra.mxu1 %v2411_v13  ;;  %v2435_v31 = vld [vmem:[#allocation9 + $0x1f0] ss:$24 sps:$4 sm:$0xff]   ;;  %v2439_v13 = vld [vmem:[#allocation9 + $0x2dc] ss:$24 sps:$4 sm:$0xff]  }
  0x9a   :  { %1062 = vmatprep.subr.bf16.mxu0 %v2415_v27  ;;  %1095 = vmatprep.subr.bf16.mxu1 %v2417_v9  ;;  %2912 = vst [vmem:[#allocation57_spill] sm:$0xff] %v2435_v31  ;;  %2913 = vst [vmem:[#allocation58_spill] sm:$0xff] %v2439_v13  ;;  %v2441_v27 = vld [vmem:[#allocation9 + $0x224] ss:$24 sps:$4 sm:$0xff]   ;;  %v2445_v9 = vld [vmem:[#allocation9 + $0x2d8] ss:$24 sps:$4 sm:$0xff]  }
  0x9b   :  { %2914 = vst [vmem:[#allocation59_spill] sm:$0xff] %v2441_v27  ;;  %2915 = vst [vmem:[#allocation60_spill] sm:$0xff] %v2445_v9 }
  0x9d   :  { %1063 = vmatpush1.bf16.msra.mxu0 %v2421_v23  ;;  %1096 = vmatpush1.bf16.msra.mxu1 %v2423_v5  ;;  %v2447_v23 = vld [vmem:[#allocation9 + $0x220] ss:$24 sps:$4 sm:$0xff]   ;;  %v2451_v5 = vld [vmem:[#allocation9 + $0x254] ss:$24 sps:$4 sm:$0xff]  }
  0x9e   :  { %1064 = vmatprep.subr.bf16.mxu0 %v2427_v20  ;;  %1097 = vmatprep.subr.bf16.mxu1 %v2429_v0  ;;  %2916 = vst [vmem:[#allocation61_spill] sm:$0xff] %v2447_v23  ;;  %2917 = vst [vmem:[#allocation62_spill] sm:$0xff] %v2451_v5  ;;  %v2455_v0 = vld [vmem:[#allocation9 + $0x250] ss:$24 sps:$4 sm:$0xff]  }
  0xa1   :  { %1065 = vmatpush1.bf16.msra.mxu0 %v2433_v17  ;;  %1098 = vmatpush1.bf16.msra.mxu1 %v2435_v31  ;;  %v2458_v17 = vld [vmem:[#allocation9 + $0x284] ss:$24 sps:$4 sm:$0xff]   ;;  %v2918_v31 = vmov 0  }
  0xa2   :  { %1066 = vmatprep.subr.bf16.mxu0 %v2439_v13  ;;  %1099 = vmatprep.subr.bf16.mxu1 %v2441_v27  ;;  %v2463_v13 = vld [vmem:[#allocation9 + $0x280] ss:$24 sps:$4 sm:$0xff]   ;;  %v2467_v27 = vld [vmem:[#allocation9 + $0x2b4] ss:$24 sps:$4 sm:$0xff]  }
  0xa5   :  { %1067 = vmatpush1.bf16.msra.mxu0 %v2445_v9  ;;  %1100 = vmatpush1.bf16.msra.mxu1 %v2447_v23  ;;  %v2475_v23 = vld [vmem:[#allocation9 + $0x2e4] ss:$24 sps:$4 sm:$0xff]  }
  0xa6   :  { %1101 = vmatprep.subr.bf16.mxu1 %v2451_v5  ;;  %1170 = vmatprep.subr.bf16.mxu0 %v2176_v2  ;;  %v2471_v5 = vld [vmem:[#allocation9 + $0x2b0] ss:$24 sps:$4 sm:$0xff]  }
  0xa8   :  { %1069 = vmatmul.mubr.bf16.vlgmr.msra.gmra.mrb[12].mxu0 %v2918_v31 }
  0xa9   :  { %1102 = vmatpush1.bf16.msra.mxu1 %v2455_v0  ;;  %1171 = vmatpush1.bf16.msra.mxu0 %v2178_v4  ;;  %v2479_v4 = vld [vmem:[#allocation9 + $0x2e0] ss:$24 sps:$4 sm:$0xff]  }
  0xaa   :  { %1103 = vmatprep.subr.bf16.mxu1 %v2458_v17  ;;  %1172 = vmatprep.subr.bf16.mxu0 %v2182_v6  ;;  %v2919_v6 = vld [vmem:[#allocation14_spill] sm:$0xff] }
  0xad   :  { %1104 = vmatpush1.bf16.msra.mxu1 %v2463_v13  ;;  %1173 = vmatpush1.bf16.msra.mxu0 %v2184_v8  ;;  %v2920_v8 = vld [vmem:[#allocation46_spill] sm:$0xff] }
  0xae   :  { %1105 = vmatprep.subr.bf16.mxu1 %v2467_v27  ;;  %1174 = vmatprep.subr.bf16.mxu0 %v2187_v10  ;;  %v2921_v10 = vld [vmem:[#allocation15_spill] sm:$0xff] }
  0xb1   :  { %1106 = vmatpush1.bf16.msra.mxu1 %v2471_v5  ;;  %1175 = vmatpush1.bf16.msra.mxu0 %v2189_v12  ;;  %v2922_v12 = vld [vmem:[#allocation48_spill] sm:$0xff] }
  0xb2   :  { %1107 = vmatprep.subr.bf16.mxu1 %v2475_v23  ;;  %1176 = vmatprep.subr.bf16.mxu0 %v2193_v14  ;;  %v2923_v14 = vld [vmem:[#allocation50_spill] sm:$0xff] }
  0xb5   :  { %1108 = vmatpush1.bf16.msra.mxu1 %v2479_v4  ;;  %1177 = vmatpush1.bf16.msra.mxu0 %v2195_v16  ;;  %v2924_v16 = vld [vmem:[#allocation52_spill] sm:$0xff] }
  0xb6   :  { %1211 = vmatprep.subr.bf16.mxu1 %v2257_v52  ;;  %1178 = vmatprep.subr.bf16.mxu0 %v2199_v19  ;;  %v2925_v19 = vld [vmem:[#allocation56_spill] sm:$0xff] }
  0xb8   :  { %1110 = vmatmul.mubr.bf16.vlgmr.msra.gmra.mrb[4].mxu1 %v2918_v31 }
  0xb9   :  { %1212 = vmatpush1.bf16.msra.mxu1 %v2259_v53  ;;  %1179 = vmatpush1.bf16.msra.mxu0 %v2204_v22  ;;  %v2926_v22 = vld [vmem:[#allocation58_spill] sm:$0xff] }
  0xba   :  { %1213 = vmatprep.subr.bf16.mxu1 %v2268_v56  ;;  %1180 = vmatprep.subr.bf16.mxu0 %v2207_v24  ;;  %v95_v24 = vlaneseq }
  0xbc   :  { %v2545_v31 = vshrl.u32 %v95_v24, 7 }
  0xbd   :  { %1214 = vmatpush1.bf16.msra.mxu1 %v2272_v57  ;;  %1181 = vmatpush1.bf16.msra.mxu0 %v2212_v26 }
  0xbe   :  { %1215 = vmatprep.subr.bf16.mxu1 %v2282_v60  ;;  %1182 = vmatprep.subr.bf16.mxu0 %v2215_v28  ;;  %2927 = vst [vmem:[#allocation14_spill] sm:$0xff] %v2545_v31 }
  0xc1   :  { %1216 = vmatpush1.bf16.msra.mxu1 %v2285_v61  ;;  %1183 = vmatpush1.bf16.msra.mxu0 %v2219_v30 }
  0xc2   :  { %1217 = vmatprep.subr.bf16.mxu1 %v2295_v1  ;;  %1184 = vmatprep.subr.bf16.mxu0 %v2222_v32 }
  0xc5   :  { %1218 = vmatpush1.bf16.msra.mxu1 %v2297_v3  ;;  %1185 = vmatpush1.bf16.msra.mxu0 %v2225_v34 }
  0xc6   :  { %1219 = vmatprep.subr.bf16.mxu1 %v2305_v7  ;;  %1186 = vmatprep.subr.bf16.mxu0 %v2228_v36 }
  0xc9   :  { %1220 = vmatpush1.bf16.msra.mxu1 %v2309_v11  ;;  %1187 = vmatpush1.bf16.msra.mxu0 %v2230_v38 }
  0xca   :  { %1221 = vmatprep.subr.bf16.mxu1 %v2317_v15  ;;  %1188 = vmatprep.subr.bf16.mxu0 %v2234_v40 }
  0xcd   :  { %1222 = vmatpush1.bf16.msra.mxu1 %v2322_v18  ;;  %1189 = vmatpush1.bf16.msra.mxu0 %v2239_v42 }
  0xce   :  { %1223 = vmatprep.subr.bf16.mxu1 %v2330_v21  ;;  %1190 = vmatprep.subr.bf16.mxu0 %v2242_v44 }
  0xd1   :  { %1224 = vmatpush1.bf16.msra.mxu1 %v2335_v25  ;;  %1191 = vmatpush1.bf16.msra.mxu0 %v2245_v46 }
  0xd2   :  { %1225 = vmatprep.subr.bf16.mxu1 %v2343_v29  ;;  %1192 = vmatprep.subr.bf16.mxu0 %v2249_v48 }
  0xd5   :  { %1226 = vmatpush1.bf16.msra.mxu1 %v2347_v33  ;;  %1193 = vmatpush1.bf16.msra.mxu0 %v2252_v50 }
  0xd6   :  { %1227 = vmatprep.subr.bf16.mxu1 %v2355_v37  ;;  %1194 = vmatprep.subr.bf16.mxu0 %v2255_v51 }
  0xd9   :  { %1228 = vmatpush1.bf16.msra.mxu1 %v2361_v41  ;;  %1195 = vmatpush1.bf16.msra.mxu0 %v2262_v54 }
  0xda   :  { %1229 = vmatprep.subr.bf16.mxu1 %v2367_v45  ;;  %1196 = vmatprep.subr.bf16.mxu0 %v2266_v55 }
  0xdd   :  { %1230 = vmatpush1.bf16.msra.mxu1 %v2373_v49  ;;  %1197 = vmatpush1.bf16.msra.mxu0 %v2276_v58 }
  0xde   :  { %1231 = vmatprep.subr.bf16.mxu1 %v2379_v35  ;;  %1198 = vmatprep.subr.bf16.mxu0 %v2280_v59  ;;  %v109_v35 = vsub.s32 3, %v2545_v31 }
  0xe1   :  { %1232 = vmatpush1.bf16.msra.mxu1 %v2385_v39  ;;  %1199 = vmatpush1.bf16.msra.mxu0 %v2289_v62  ;;  %v105_v39 = vsub.s32 2, %v2545_v31 }
  0xe2   :  { %1233 = vmatprep.subr.bf16.mxu1 %v2391_v43  ;;  %1200 = vmatprep.subr.bf16.mxu0 %v2293_v63 }
  0xe5   :  { %1234 = vmatpush1.bf16.msra.mxu1 %v2397_v47  ;;  %1201 = vmatpush1.bf16.msra.mxu0 %v2919_v6 }
  0xe6   :  { %1235 = vmatprep.subr.bf16.mxu1 %v2920_v8  ;;  %1252 = vmatprep.subr.bf16.mxu0 %v2921_v10  ;;  %v2548_v8 = vsub.s32 0, %v2545_v31 }
  0xe8   :  { %2928 = vst [vmem:[#allocation15_spill] sm:$0xff] %v2548_v8 }
  0xe9   :  { %1236 = vmatpush1.bf16.msra.mxu1 %v2922_v12 }
  0xea   :  { %1237 = vmatprep.subr.bf16.mxu1 %v2923_v14 }
  0xed   :  { %1238 = vmatpush1.bf16.msra.mxu1 %v2924_v16  ;;  %v93_v16 = vld [vmem:[%s2771_s2] sm:$0x3f] }
  0xee   :  { %1239 = vmatprep.subr.bf16.mxu1 %v2427_v20  ;;  %v2554_v20 = vsub.s32 1, %v2545_v31  ;;  %v106_v49 = vrot.slane %v93_v16, %v105_v39  ;;  %v110_v45 = vrot.slane %v93_v16, %v109_v35 }
  0xf0   :  { %2929 = vst [vmem:[#allocation63_spill] sm:$0xff] %v2554_v20 }
  0xf1   :  { %1240 = vmatpush1.bf16.msra.mxu1 %v2925_v19  ;;  %v98_v19 = vrot.slane %v93_v16, %v2548_v8 }
  0xf2   :  { %1241 = vmatprep.subr.bf16.mxu1 %v2926_v22  ;;  %v102_v22 = vrot.slane %v93_v16, %v2554_v20 }
  0xf5   :  { %1242 = vmatpush1.bf16.msra.mxu1 %v2445_v9 }
  0xf6   :  { %1345 = vmatprep.subr.bf16.mxu1 %v2176_v2 }
 0x11b   :  { %v283_v9 = vpop.f32.mrb[0].mxu0 }
 0x11c   :  { %v284_v14 = vadd.f32 %v283_v9, %v98_v19  ;;  %v285_v2 = vpop.f32.mrb[1].mxu0  ;;  %v113_v9 = vsub.s32 4, %v2545_v31 }
 0x11d   :  { %v286_v12 = vadd.f32 %v285_v2, %v102_v22  ;;  %v287_v24 = vpop.f32.mrb[2].mxu0 }
 0x11e   :  { %v288_v47 = vpop.f32.mrb[3].mxu0 }
 0x11f   :  { %v378_v43 = vcombine.low %v284_v14, %v286_v12  ;;  %v117_v47 = vsub.s32 5, %v2545_v31  ;;  %v114_v12 = vrot.slane %v93_v16, %v113_v9 }
 0x121   :  { %384 = vst [vmem:[#allocation2] sm:$0x77] %v378_v43  ;;  %v118_v43 = vrot.slane %v93_v16, %v117_v47 }
 0x128   :  { %v1119_v16 = vld [vmem:[#allocation2 + $0x6] sm:$0x1] }
 0x12b   :  { %v324_v41 = vpop.f32.mrb[4].mxu0 }
 0x12c   :  { %v325_v37 = vadd.f32 %v324_v41, %v106_v49  ;;  %v326_v33 = vpop.f32.mrb[5].mxu0  ;;  %v1118_v49 = vld [vmem:[#allocation2] sm:$0x1] }
 0x12d   :  { %v327_v29 = vadd.f32 %v326_v33, %v110_v45  ;;  %v328_v25 = vpop.f32.mrb[6].mxu0 }
 0x12e   :  { %v329_v21 = vpop.f32.mrb[7].mxu0 }
 0x12f   :  { %v379_v18 = vcombine.low %v325_v37, %v327_v29 }
 0x131   :  { %385 = vst [vmem:[#allocation2 + $0x8] sm:$0x77] %v379_v18  ;;  %v483_v18 = vld [vmem:[%s2773_s4] sm:$0x3f] }
 0x132   :  { %v2566_v29 = vrot.slane %v483_v18, %v2548_v8  ;;  %v2569_v37 = vrot.slane %v483_v18, %v2554_v20  ;;  %v2581_v31 = vrot.slane %v483_v18, %v117_v47 }
 0x134   :  { %2931 = vst [vmem:[#allocation65_spill] sm:$0xff] %v2581_v31 }
 0x138   :  { %v1120_v8 = vld [vmem:[#allocation2 + $0x8] sm:$0x1] }
 0x13b   :  { %v365_v14 = vpop.f32.mrb[8].mxu0 }
 0x13c   :  { %v366_v19 = vadd.f32 %v365_v14, %v114_v12  ;;  %v367_v22 = vpop.f32.mrb[9].mxu0 }
 0x13d   :  { %v368_v2 = vadd.f32 %v367_v22, %v118_v43  ;;  %v369_v24 = vpop.f32.mrb[10].mxu0 }
 0x13e   :  { %v370_v15 = vpop.f32.mrb[11].mxu0  ;;  %v2575_v24 = vrot.slane %v483_v18, %v109_v35 }
 0x13f   :  { %v380_v11 = vcombine.low %v366_v19, %v368_v2  ;;  %v2573_v2 = vrot.slane %v483_v18, %v105_v39 }
 0x141   :  { %386 = vst [vmem:[#allocation2 + $0x10] sm:$0x77] %v380_v11 }
 0x148   :  { %v1123_v47 = vld [vmem:[#allocation2 + $0x16] sm:$0x1] }
 0x14b   :  { %v1029_v41 = vpop.f32.mrb[0].mxu1 }
 0x14c   :  { %v1031_v33 = vpop.f32.mrb[1].mxu1  ;;  %v1030_v45 = vadd.f32 %v1029_v41, %v2566_v29 }
 0x14d   :  { %v1033_v25 = vpop.f32.mrb[2].mxu1  ;;  %v1032_v15 = vadd.f32 %v1031_v33, %v2569_v37 }
 0x14e   :  { %v1034_v21 = vpop.f32.mrb[3].mxu1  ;;  %v1124_v11 = vadd.f32 %v1118_v49, %v1030_v45 }
 0x14f   :  { %v1125_v12 = vadd.f32 %v1119_v16, %v1032_v15  ;;  %v1121_v16 = vld [vmem:[#allocation2 + $0xe] sm:$0x1] }
 0x150   :  { %v1126_v43 = vsub.f32 0.0, %v1124_v11 }
 0x151   :  { %v1127_v14 = vsub.f32 0.0, %v1125_v12 }
 0x152   :  { %v1128_v19 = vmul.f32 1.442695, %v1126_v43 }
 0x153   :  { %v1130_v22 = vmul.f32 1.442695, %v1127_v14 }
 0x154   :  { %1918 = vpow2.f32 %v1128_v19 }
 0x155   :  { %1920 = vpow2.f32 %v1130_v22 }
 0x15e   :  { %v1919_v25 = vpop.eup %1918 }
 0x15f   :  { %v1921_v20 = vpop.eup %1920  ;;  %v1132_v49 = vadd.f32 1.0, %v1919_v25 }
 0x160   :  { %v1133_v43 = vadd.f32 1.0, %v1921_v20 }
 0x161   :  { %1922 = vrcp.f32 %v1132_v49 }
 0x162   :  { %1924 = vrcp.f32 %v1133_v43 }
 0x17b   :  { %v1070_v21 = vpop.f32.mrb[12].mxu0 }
 0x17c   :  { %v1071_v41 = vadd.f32 %v1070_v21, %v2573_v2  ;;  %v1072_v33 = vpop.f32.mrb[13].mxu0  ;;  %v2579_v21 = vrot.slane %v483_v18, %v113_v9 }
 0x17d   :  { %v1073_v45 = vadd.f32 %v1072_v33, %v2575_v24  ;;  %v1074_v15 = vpop.f32.mrb[14].mxu0 }
 0x17e   :  { %v1138_v11 = vadd.f32 %v1120_v8, %v1071_v41  ;;  %v1075_v12 = vpop.f32.mrb[15].mxu0  ;;  %2930 = vst [vmem:[#allocation64_spill] sm:$0xff] %v2579_v21  ;;  %v1923_v15 = vpop.eup %1922 }
 0x17f   :  { %v1139_v14 = vadd.f32 %v1121_v16, %v1073_v45  ;;  %v1925_v41 = vpop.eup %1924 }
 0x180   :  { %v1140_v39 = vsub.f32 0.0, %v1138_v11 }
 0x181   :  { %v1141_v19 = vsub.f32 0.0, %v1139_v14  ;;  %v1122_v14 = vld [vmem:[#allocation2 + $0x10] sm:$0x1] }
 0x182   :  { %v1142_v35 = vmul.f32 1.442695, %v1140_v39 }
 0x183   :  { %v1144_v22 = vmul.f32 1.442695, %v1141_v19 }
 0x184   :  { %1926 = vpow2.f32 %v1142_v35 }
 0x185   :  { %1928 = vpow2.f32 %v1144_v22 }
 0x18b   :  { %v1111_v33 = vpop.f32.mrb[4].mxu1 }
 0x18c   :  { %v1112_v8 = vadd.f32 %v1111_v33, %v2579_v21  ;;  %v1113_v25 = vpop.f32.mrb[5].mxu1 }
 0x18d   :  { %v1114_v20 = vadd.f32 %v1113_v25, %v2581_v31  ;;  %v1115_v45 = vpop.f32.mrb[6].mxu1 }
 0x18e   :  { %v1927_v11 = vpop.eup %1926  ;;  %v1152_v49 = vmul.f32 %v1923_v15, %v1112_v8  ;;  %v1116_v16 = vpop.f32.mrb[7].mxu1 }
 0x18f   :  { %v1929_v12 = vpop.eup %1928  ;;  %v1146_v43 = vadd.f32 1.0, %v1927_v11  ;;  %v1153_v39 = vmul.f32 %v1925_v41, %v1114_v20 }
 0x190   :  { %v1147_v9 = vadd.f32 1.0, %v1929_v12  ;;  %v1154_v19 = vadd.f32 %v1152_v49, %v1122_v14  ;;  %v2933_v12 = vld [vmem:[#allocation19_spill] sm:$0xff] }
 0x191   :  { %1930 = vrcp.f32 %v1146_v43  ;;  %v1155_v18 = vadd.f32 %v1153_v39, %v1123_v47  ;;  %v1980_v43 = vld [vmem:[#allocation9] ss:$24 sps:$4 sm:$0xff]   ;;  %v1981_v14 = vld [vmem:[#allocation9 + $0x34] ss:$24 sps:$4 sm:$0xff]   ;;  %v1983_v47 = vld [vmem:[#allocation9 + $0x64] ss:$24 sps:$4 sm:$0xff]  }
 0x192   :  { %1932 = vrcp.f32 %v1147_v9  ;;  %v2934_v39 = vld [vmem:[#allocation21_spill] sm:$0xff]  ;;  %v2935_v9 = vld [vmem:[#allocation23_spill] sm:$0xff] }
 0x193   :  { %1934 = vtanh.f32 %v1154_v19  ;;  %v1982_v19 = vld [vmem:[#allocation9 + $0x30] ss:$24 sps:$4 sm:$0xff]  }
 0x194   :  { %1936 = vtanh.f32 %v1155_v18  ;;  %v2936_v18 = vld [vmem:[#allocation25_spill] sm:$0xff] }
 0x19b   :  { %v1931_v35 = vpop.eup %1930 }
 0x19c   :  { %v1933_v22 = vpop.eup %1932  ;;  %v1158_v33 = vsub.f32 1.0, %v1931_v35  ;;  %v1162_v8 = vmul.f32 0.0, %v1931_v35  ;;  %v2937_v35 = vld [vmem:[#allocation27_spill] sm:$0xff] }
 0x19d   :  { %v1935_v25 = vpop.eup %1934  ;;  %v1159_v45 = vsub.f32 1.0, %v1933_v22  ;;  %v1163_v11 = vmul.f32 0.0, %v1933_v22  ;;  %v1984_v22 = vld [vmem:[#allocation9 + $0x60] ss:$24 sps:$4 sm:$0xff]  }
 0x19e   :  { %v1937_v31 = vpop.eup %1936  ;;  %v1160_v15 = vmul.f32 %v1935_v25, %v1158_v33  ;;  %v1985_v33 = vld [vmem:[#allocation9 + $0x94] ss:$24 sps:$4 sm:$0xff]   ;;  %v2938_v25 = vld [vmem:[#allocation29_spill] sm:$0xff] }
 0x19f   :  { %v1161_v16 = vmul.f32 %v1937_v31, %v1159_v45  ;;  %v2932_v31 = vld [vmem:[#allocation17_spill] sm:$0xff]  ;;  %v2939_v45 = vld [vmem:[#allocation31_spill] sm:$0xff] }
 0x1a0   :  { %v2585_v21 = vadd.f32 %v1162_v8, %v1160_v15  ;;  %v1986_v15 = vld [vmem:[#allocation9 + $0x90] ss:$24 sps:$4 sm:$0xff]   ;;  %v1987_v8 = vld [vmem:[#allocation9 + $0xc4] ss:$24 sps:$4 sm:$0xff]  }
 0x1a1   :  { %v2587_v41 = vadd.f32 %v1163_v11, %v1161_v16  ;;  %v2940_v16 = vld [vmem:[#allocation33_spill] sm:$0xff]  ;;  %v2941_v11 = vld [vmem:[#allocation35_spill] sm:$0xff] }
 0x1a2   :  { %1166 = vst [vmem:[#allocation3] sm:$0x1] %v2585_v21  ;;  %v2595_v49 = vpack.c.bf16 %v2585_v21, %v2585_v21 }
 0x1a3   :  { %1167 = vst [vmem:[#allocation3 + $0x6] sm:$0x1] %v2587_v41  ;;  %v1169_v20 = vpack.c.bf16 %v2587_v41, %v2587_v41 }
 0x1a5   :  { %1202 = vmatprep.mubr.bf16.mxu0 %v1169_v20  ;;  %1243 = vmatprep.mubr.bf16.mxu1 %v1169_v20 }
 0x1a6   :  { %1203 = vmatmul.mubr.bf16.vlgmr.msra.gmra.mrb[16].mxu0 %v2595_v49  ;;  %1244 = vmatmul.mubr.bf16.vlgmr.msra.gmra.mrb[8].mxu1 %v2595_v49 }
 0x1a7   :  { %1253 = vmatpush1.bf16.msra.mxu0 %v2932_v31  ;;  %1284 = vmatprep.mubr.bf16.mxu0 %v1169_v20  ;;  %v1988_v20 = vld [vmem:[#allocation9 + $0xc0] ss:$24 sps:$4 sm:$0xff]  }
 0x1a8   :  { %1254 = vmatprep.subr.bf16.mxu0 %v2933_v12  ;;  %1346 = vmatpush1.bf16.msra.mxu1 %v1980_v43  ;;  %v1989_v43 = vld [vmem:[#allocation9 + $0xf4] ss:$24 sps:$4 sm:$0xff]  }
 0x1a9   :  { %1347 = vmatprep.subr.bf16.mxu1 %v1981_v14  ;;  %v2942_v14 = vld [vmem:[#allocation37_spill] sm:$0xff] }
 0x1ab   :  { %1255 = vmatpush1.bf16.msra.mxu0 %v2934_v39 }
 0x1ac   :  { %1256 = vmatprep.subr.bf16.mxu0 %v2935_v9  ;;  %1348 = vmatpush1.bf16.msra.mxu1 %v1982_v19  ;;  %v2943_v19 = vld [vmem:[#allocation39_spill] sm:$0xff] }
 0x1ad   :  { %1349 = vmatprep.subr.bf16.mxu1 %v1983_v47  ;;  %v2944_v47 = vld [vmem:[#allocation41_spill] sm:$0xff] }
 0x1af   :  { %1257 = vmatpush1.bf16.msra.mxu0 %v2936_v18 }
 0x1b0   :  { %1258 = vmatprep.subr.bf16.mxu0 %v2937_v35  ;;  %1350 = vmatpush1.bf16.msra.mxu1 %v1984_v22  ;;  %v2945_v22 = vld [vmem:[#allocation43_spill] sm:$0xff] }
 0x1b1   :  { %1351 = vmatprep.subr.bf16.mxu1 %v1985_v33  ;;  %v2946_v33 = vld [vmem:[#allocation45_spill] sm:$0xff] }
 0x1b3   :  { %1259 = vmatpush1.bf16.msra.mxu0 %v2938_v25 }
 0x1b4   :  { %1260 = vmatprep.subr.bf16.mxu0 %v2939_v45  ;;  %1352 = vmatpush1.bf16.msra.mxu1 %v1986_v15  ;;  %v2947_v15 = vld [vmem:[#allocation47_spill] sm:$0xff] }
 0x1b5   :  { %1353 = vmatprep.subr.bf16.mxu1 %v1987_v8  ;;  %v2948_v8 = vld [vmem:[#allocation49_spill] sm:$0xff] }
 0x1b7   :  { %1261 = vmatpush1.bf16.msra.mxu0 %v2940_v16 }
 0x1b8   :  { %1262 = vmatprep.subr.bf16.mxu0 %v2941_v11  ;;  %1354 = vmatpush1.bf16.msra.mxu1 %v1988_v20 }
 0x1b9   :  { %1355 = vmatprep.subr.bf16.mxu1 %v1989_v43 }
 0x1bb   :  { %1263 = vmatpush1.bf16.msra.mxu0 %v2942_v14 }
 0x1bc   :  { %1264 = vmatprep.subr.bf16.mxu0 %v2943_v19  ;;  %1356 = vmatpush1.bf16.msra.mxu1 %v2212_v26  ;;  %v2949_v26 = vld [vmem:[#allocation51_spill] sm:$0xff] }
 0x1bd   :  { %1357 = vmatprep.subr.bf16.mxu1 %v2215_v28  ;;  %v2950_v28 = vld [vmem:[#allocation53_spill] sm:$0xff] }
 0x1bf   :  { %1265 = vmatpush1.bf16.msra.mxu0 %v2944_v47 }
 0x1c0   :  { %1266 = vmatprep.subr.bf16.mxu0 %v2945_v22  ;;  %1358 = vmatpush1.bf16.msra.mxu1 %v2219_v30  ;;  %v2951_v30 = vld [vmem:[#allocation55_spill] sm:$0xff] }
 0x1c1   :  { %1359 = vmatprep.subr.bf16.mxu1 %v2222_v32  ;;  %v2952_v32 = vld [vmem:[#allocation57_spill] sm:$0xff] }
 0x1c3   :  { %1267 = vmatpush1.bf16.msra.mxu0 %v2946_v33 }
 0x1c4   :  { %1268 = vmatprep.subr.bf16.mxu0 %v2947_v15  ;;  %1360 = vmatpush1.bf16.msra.mxu1 %v2225_v34  ;;  %v2953_v34 = vld [vmem:[#allocation59_spill] sm:$0xff] }
 0x1c5   :  { %1361 = vmatprep.subr.bf16.mxu1 %v2228_v36  ;;  %v2954_v36 = vld [vmem:[#allocation61_spill] sm:$0xff] }
 0x1c7   :  { %1269 = vmatpush1.bf16.msra.mxu0 %v2948_v8 }
 0x1c8   :  { %1270 = vmatprep.subr.bf16.mxu0 %v2949_v26  ;;  %1362 = vmatpush1.bf16.msra.mxu1 %v2230_v38  ;;  %v2955_v38 = vld [vmem:[#allocation62_spill] sm:$0xff] }
 0x1c9   :  { %1363 = vmatprep.subr.bf16.mxu1 %v2234_v40  ;;  %v2956_v40 = vld [vmem:[#allocation16_spill] sm:$0xff] }
 0x1cb   :  { %1271 = vmatpush1.bf16.msra.mxu0 %v2950_v28 }
 0x1cc   :  { %1272 = vmatprep.subr.bf16.mxu0 %v2951_v30  ;;  %1364 = vmatpush1.bf16.msra.mxu1 %v2239_v42  ;;  %v2957_v42 = vld [vmem:[#allocation18_spill] sm:$0xff] }
 0x1cd   :  { %1365 = vmatprep.subr.bf16.mxu1 %v2242_v44  ;;  %v2958_v44 = vld [vmem:[#allocation20_spill] sm:$0xff] }
 0x1cf   :  { %1273 = vmatpush1.bf16.msra.mxu0 %v2952_v32 }
 0x1d0   :  { %1274 = vmatprep.subr.bf16.mxu0 %v2953_v34  ;;  %1366 = vmatpush1.bf16.msra.mxu1 %v2245_v46  ;;  %v2959_v46 = vld [vmem:[#allocation22_spill] sm:$0xff] }
 0x1d1   :  { %1367 = vmatprep.subr.bf16.mxu1 %v2249_v48  ;;  %v2960_v48 = vld [vmem:[#allocation24_spill] sm:$0xff] }
 0x1d3   :  { %1275 = vmatpush1.bf16.msra.mxu0 %v2954_v36 }
 0x1d4   :  { %1276 = vmatprep.subr.bf16.mxu0 %v2955_v38  ;;  %1368 = vmatpush1.bf16.msra.mxu1 %v2252_v50  ;;  %v2961_v50 = vld [vmem:[#allocation26_spill] sm:$0xff] }
 0x1d5   :  { %1369 = vmatprep.subr.bf16.mxu1 %v2255_v51  ;;  %v2962_v51 = vld [vmem:[#allocation28_spill] sm:$0xff] }
 0x1d7   :  { %1277 = vmatpush1.bf16.msra.mxu0 %v2455_v0 }
 0x1d8   :  { %1278 = vmatprep.subr.bf16.mxu0 %v2458_v17  ;;  %1370 = vmatpush1.bf16.msra.mxu1 %v2262_v54  ;;  %v2965_v54 = vld [vmem:[#allocation34_spill] sm:$0xff] }
 0x1d9   :  { %1371 = vmatprep.subr.bf16.mxu1 %v2266_v55  ;;  %v2966_v55 = vld [vmem:[#allocation36_spill] sm:$0xff] }
 0x1db   :  { %1279 = vmatpush1.bf16.msra.mxu0 %v2463_v13 }
 0x1dc   :  { %1280 = vmatprep.subr.bf16.mxu0 %v2467_v27  ;;  %1372 = vmatpush1.bf16.msra.mxu1 %v2276_v58  ;;  %v2969_v58 = vld [vmem:[#allocation42_spill] sm:$0xff] }
 0x1dd   :  { %1373 = vmatprep.subr.bf16.mxu1 %v2280_v59  ;;  %v2970_v59 = vld [vmem:[#allocation44_spill] sm:$0xff] }
 0x1df   :  { %1281 = vmatpush1.bf16.msra.mxu0 %v2471_v5 }
 0x1e0   :  { %1282 = vmatprep.subr.bf16.mxu0 %v2475_v23  ;;  %1374 = vmatpush1.bf16.msra.mxu1 %v2289_v62  ;;  %v2973_v62 = vld [vmem:[#allocation50_spill] sm:$0xff] }
 0x1e1   :  { %1375 = vmatprep.subr.bf16.mxu1 %v2293_v63  ;;  %v2974_v63 = vld [vmem:[#allocation52_spill] sm:$0xff] }
 0x1e3   :  { %1283 = vmatpush1.bf16.msra.mxu0 %v2479_v4 }
 0x1e4   :  { %1386 = vmatprep.subr.bf16.mxu0 %v2257_v52  ;;  %1376 = vmatpush1.bf16.msra.mxu1 %v2919_v6  ;;  %v2963_v52 = vld [vmem:[#allocation30_spill] sm:$0xff]  ;;  %v2978_v6 = vld [vmem:[#allocation60_spill] sm:$0xff] }
 0x1e5   :  { %1427 = vmatprep.subr.bf16.mxu1 %v2921_v10 }
 0x1e6   :  { %1285 = vmatmul.mubr.bf16.vlgmr.msra.gmra.mrb[20].mxu0 %v2595_v49 }
 0x1e7   :  { %1387 = vmatpush1.bf16.msra.mxu0 %v2259_v53  ;;  %v2964_v53 = vld [vmem:[#allocation32_spill] sm:$0xff] }
 0x1e8   :  { %1388 = vmatprep.subr.bf16.mxu0 %v2268_v56  ;;  %v2967_v56 = vld [vmem:[#allocation38_spill] sm:$0xff] }
 0x1eb   :  { %1389 = vmatpush1.bf16.msra.mxu0 %v2272_v57  ;;  %v2968_v57 = vld [vmem:[#allocation40_spill] sm:$0xff] }
 0x1ec   :  { %1390 = vmatprep.subr.bf16.mxu0 %v2282_v60  ;;  %v2971_v60 = vld [vmem:[#allocation46_spill] sm:$0xff] }
 0x1ef   :  { %1391 = vmatpush1.bf16.msra.mxu0 %v2285_v61  ;;  %v2972_v61 = vld [vmem:[#allocation48_spill] sm:$0xff] }
 0x1f0   :  { %1392 = vmatprep.subr.bf16.mxu0 %v2295_v1  ;;  %v2975_v1 = vld [vmem:[#allocation54_spill] sm:$0xff] }
 0x1f3   :  { %1393 = vmatpush1.bf16.msra.mxu0 %v2297_v3  ;;  %v2976_v3 = vld [vmem:[#allocation56_spill] sm:$0xff] }
 0x1f4   :  { %1394 = vmatprep.subr.bf16.mxu0 %v2305_v7  ;;  %v2977_v7 = vld [vmem:[#allocation58_spill] sm:$0xff] }
 0x1f7   :  { %1395 = vmatpush1.bf16.msra.mxu0 %v2956_v40 }
 0x1f8   :  { %1396 = vmatprep.subr.bf16.mxu0 %v2957_v42 }
 0x1fb   :  { %1397 = vmatpush1.bf16.msra.mxu0 %v2958_v44 }
 0x1fc   :  { %1398 = vmatprep.subr.bf16.mxu0 %v2959_v46 }
 0x1ff   :  { %1399 = vmatpush1.bf16.msra.mxu0 %v2960_v48 }
 0x200   :  { %1400 = vmatprep.subr.bf16.mxu0 %v2961_v50 }
 0x203   :  { %1401 = vmatpush1.bf16.msra.mxu0 %v2962_v51  ;;  %v1293_v51 = vld [vmem:[#allocation2 + $0x1] sm:$0x1] }
 0x204   :  { %1402 = vmatprep.subr.bf16.mxu0 %v2963_v52 }
 0x207   :  { %1403 = vmatpush1.bf16.msra.mxu0 %v2964_v53  ;;  %v1294_v53 = vld [vmem:[#allocation2 + $0x5] sm:$0x1] }
 0x208   :  { %1404 = vmatprep.subr.bf16.mxu0 %v2965_v54 }
 0x20b   :  { %1405 = vmatpush1.bf16.msra.mxu0 %v2966_v55 }
 0x20c   :  { %1406 = vmatprep.subr.bf16.mxu0 %v2967_v56 }
 0x20f   :  { %1407 = vmatpush1.bf16.msra.mxu0 %v2968_v57 }
 0x210   :  { %1408 = vmatprep.subr.bf16.mxu0 %v2969_v58 }
 0x213   :  { %1409 = vmatpush1.bf16.msra.mxu0 %v2970_v59 }
 0x214   :  { %1410 = vmatprep.subr.bf16.mxu0 %v2971_v60 }
 0x217   :  { %1411 = vmatpush1.bf16.msra.mxu0 %v2972_v61  ;;  %v1295_v61 = vld [vmem:[#allocation2 + $0x9] sm:$0x1] }
 0x218   :  { %1412 = vmatprep.subr.bf16.mxu0 %v2973_v62 }
 0x21b   :  { %1413 = vmatpush1.bf16.msra.mxu0 %v2974_v63  ;;  %v1296_v63 = vld [vmem:[#allocation2 + $0xd] sm:$0x1] }
 0x21c   :  { %1414 = vmatprep.subr.bf16.mxu0 %v2975_v1 }
 0x21f   :  { %1415 = vmatpush1.bf16.msra.mxu0 %v2976_v3 }
 0x220   :  { %1416 = vmatprep.subr.bf16.mxu0 %v2977_v7 }
 0x223   :  { %1417 = vmatpush1.bf16.msra.mxu0 %v2978_v6 }
 0x279   :  { %v1204_v10 = vpop.f32.mrb[16].mxu0  ;;  %v1245_v49 = vpop.f32.mrb[8].mxu1 }
 0x27a   :  { %v1206_v20 = vpop.f32.mrb[17].mxu0  ;;  %v1247_v43 = vpop.f32.mrb[9].mxu1  ;;  %v1205_v48 = vadd.f32 %v1204_v10, %v2566_v29  ;;  %v1246_v57 = vadd.f32 %v1245_v49, %v2573_v2 }
 0x27b   :  { %v1208_v40 = vpop.f32.mrb[18].mxu0  ;;  %v1249_v42 = vpop.f32.mrb[10].mxu1  ;;  %v1207_v50 = vadd.f32 %v1206_v20, %v2569_v37  ;;  %v1248_v59 = vadd.f32 %v1247_v43, %v2575_v24 }
 0x27c   :  { %v1209_v44 = vpop.f32.mrb[19].mxu0  ;;  %v1250_v46 = vpop.f32.mrb[11].mxu1  ;;  %v1299_v52 = vadd.f32 %v1293_v51, %v1205_v48  ;;  %v1313_v62 = vadd.f32 %v1295_v61, %v1246_v57  ;;  %v2979_v51 = vld [vmem:[#allocation64_spill] sm:$0xff]  ;;  %v1297_v61 = vld [vmem:[#allocation2 + $0x11] sm:$0x1] }
 0x27d   :  { %v1300_v54 = vadd.f32 %v1294_v53, %v1207_v50  ;;  %v1314_v1 = vadd.f32 %v1296_v63, %v1248_v59 }
 0x27e   :  { %v1301_v55 = vsub.f32 0.0, %v1299_v52  ;;  %v1315_v3 = vsub.f32 0.0, %v1313_v62 }
 0x27f   :  { %v1302_v56 = vsub.f32 0.0, %v1300_v54  ;;  %v1316_v7 = vsub.f32 0.0, %v1314_v1  ;;  %v1298_v1 = vld [vmem:[#allocation2 + $0x15] sm:$0x1] }
 0x280   :  { %v1303_v58 = vmul.f32 1.442695, %v1301_v55  ;;  %v1317_v6 = vmul.f32 1.442695, %v1315_v3  ;;  %v2980_v55 = vld [vmem:[#allocation65_spill] sm:$0xff] }
 0x281   :  { %v1305_v60 = vmul.f32 1.442695, %v1302_v56  ;;  %v1319_v10 = vmul.f32 1.442695, %v1316_v7 }
 0x282   :  { %1938 = vpow2.f32 %v1303_v58 }
 0x283   :  { %1940 = vpow2.f32 %v1305_v60 }
 0x284   :  { %1942 = vpow2.f32 %v1317_v6 }
 0x285   :  { %1944 = vpow2.f32 %v1319_v10 }
 0x28c   :  { %v1939_v20 = vpop.eup %1938 }
 0x28d   :  { %v1941_v40 = vpop.eup %1940  ;;  %v1307_v42 = vadd.f32 1.0, %v1939_v20 }
 0x28e   :  { %v1308_v49 = vadd.f32 1.0, %v1941_v40  ;;  %v1943_v43 = vpop.eup %1942 }
 0x28f   :  { %1946 = vrcp.f32 %v1307_v42  ;;  %v1945_v44 = vpop.eup %1944  ;;  %v1321_v46 = vadd.f32 1.0, %v1943_v43 }
 0x290   :  { %1948 = vrcp.f32 %v1308_v49  ;;  %v1322_v48 = vadd.f32 1.0, %v1945_v44 }
 0x291   :  { %1950 = vrcp.f32 %v1321_v46 }
 0x292   :  { %1952 = vrcp.f32 %v1322_v48 }
 0x299   :  { %v1947_v54 = vpop.eup %1946 }
 0x29a   :  { %v1949_v58 = vpop.eup %1948 }
 0x29b   :  { %v1951_v7 = vpop.eup %1950 }
 0x29c   :  { %v1953_v6 = vpop.eup %1952  ;;  %v1333_v10 = vsub.f32 1.0, %v1951_v7  ;;  %v1337_v43 = vmul.f32 %v1951_v7, %v2585_v21  ;;  %v1473_v7 = vld [vmem:[#allocation2 + $0x14] sm:$0x1] }
 0x29d   :  { %v1334_v40 = vsub.f32 1.0, %v1953_v6  ;;  %v1338_v46 = vmul.f32 %v1953_v6, %v2587_v41 }
 0x2b9   :  { %v1286_v50 = vpop.f32.mrb[20].mxu0 }
 0x2ba   :  { %v1287_v52 = vadd.f32 %v1286_v50, %v2979_v51  ;;  %v1288_v53 = vpop.f32.mrb[21].mxu0 }
 0x2bb   :  { %v1289_v56 = vadd.f32 %v1288_v53, %v2980_v55  ;;  %v1290_v57 = vpop.f32.mrb[22].mxu0 }
 0x2bc   :  { %v1327_v59 = vmul.f32 %v1947_v54, %v1287_v52  ;;  %v1291_v60 = vpop.f32.mrb[23].mxu0 }
 0x2bd   :  { %v1328_v62 = vmul.f32 %v1949_v58, %v1289_v56 }
 0x2be   :  { %v1329_v63 = vadd.f32 %v1327_v59, %v1297_v61 }
 0x2bf   :  { %v1330_v3 = vadd.f32 %v1328_v62, %v1298_v1 }
 0x2c0   :  { %1954 = vtanh.f32 %v1329_v63  ;;  %v1472_v63 = vld [vmem:[#allocation2 + $0x12] sm:$0x1] }
 0x2c1   :  { %1956 = vtanh.f32 %v1330_v3 }
 0x2ca   :  { %v1955_v20 = vpop.eup %1954 }
 0x2cb   :  { %v1957_v42 = vpop.eup %1956  ;;  %v1335_v49 = vmul.f32 %v1955_v20, %v1333_v10 }
 0x2cc   :  { %v1336_v44 = vmul.f32 %v1957_v42, %v1334_v40 }
 0x2cd   :  { %v2693_v48 = vadd.f32 %v1337_v43, %v1335_v49 }
 0x2ce   :  { %v2695_v50 = vadd.f32 %v1338_v46, %v1336_v44 }
 0x2cf   :  { %1341 = vst [vmem:[#allocation3 + $0x1] sm:$0x1] %v2693_v48  ;;  %v1343_v53 = vpack.c.bf16 %v2693_v48, %v2693_v48 }
 0x2d0   :  { %1342 = vst [vmem:[#allocation3 + $0x5] sm:$0x1] %v2695_v50  ;;  %v1344_v52 = vpack.c.bf16 %v2695_v50, %v2695_v50 }
 0x2d2   :  { %1377 = vmatprep.mubr.bf16.mxu1 %v1344_v52  ;;  %1418 = vmatprep.mubr.bf16.mxu0 %v1344_v52 }
 0x2d3   :  { %1378 = vmatmul.mubr.bf16.vlgmr.msra.gmra.mrb[12].mxu1 %v1343_v53  ;;  %1419 = vmatmul.mubr.bf16.vlgmr.msra.gmra.mrb[24].mxu0 %v1343_v53 }
 0x2d4   :  { %1428 = vmatpush1.bf16.msra.mxu1 %v2932_v31  ;;  %1459 = vmatprep.mubr.bf16.mxu1 %v1344_v52 }
 0x2d5   :  { %1429 = vmatprep.subr.bf16.mxu1 %v2933_v12 }
 0x2d8   :  { %1430 = vmatpush1.bf16.msra.mxu1 %v2934_v39 }
 0x2d9   :  { %1431 = vmatprep.subr.bf16.mxu1 %v2935_v9 }
 0x2dc   :  { %1432 = vmatpush1.bf16.msra.mxu1 %v2936_v18 }
 0x2dd   :  { %1433 = vmatprep.subr.bf16.mxu1 %v2937_v35 }
 0x2e0   :  { %1434 = vmatpush1.bf16.msra.mxu1 %v2938_v25 }
 0x2e1   :  { %1435 = vmatprep.subr.bf16.mxu1 %v2939_v45 }
 0x2e4   :  { %1436 = vmatpush1.bf16.msra.mxu1 %v2940_v16 }
 0x2e5   :  { %1437 = vmatprep.subr.bf16.mxu1 %v2941_v11 }
 0x2e8   :  { %1438 = vmatpush1.bf16.msra.mxu1 %v2942_v14 }
 0x2e9   :  { %1439 = vmatprep.subr.bf16.mxu1 %v2943_v19  ;;  %v1470_v19 = vld [vmem:[#allocation2 + $0xa] sm:$0x1] }
 0x2ec   :  { %1440 = vmatpush1.bf16.msra.mxu1 %v2944_v47 }
 0x2ed   :  { %1441 = vmatprep.subr.bf16.mxu1 %v2945_v22  ;;  %v1471_v22 = vld [vmem:[#allocation2 + $0xc] sm:$0x1] }
 0x2f0   :  { %1442 = vmatpush1.bf16.msra.mxu1 %v2946_v33 }
 0x2f1   :  { %1443 = vmatprep.subr.bf16.mxu1 %v2947_v15 }
 0x2f4   :  { %1444 = vmatpush1.bf16.msra.mxu1 %v2948_v8 }
 0x2f5   :  { %1445 = vmatprep.subr.bf16.mxu1 %v2949_v26 }
 0x2f8   :  { %1446 = vmatpush1.bf16.msra.mxu1 %v2950_v28 }
 0x2f9   :  { %1447 = vmatprep.subr.bf16.mxu1 %v2951_v30 }
 0x2fc   :  { %1448 = vmatpush1.bf16.msra.mxu1 %v2952_v32 }
 0x2fd   :  { %1449 = vmatprep.subr.bf16.mxu1 %v2953_v34 }
 0x300   :  { %1450 = vmatpush1.bf16.msra.mxu1 %v2954_v36 }
 0x301   :  { %1451 = vmatprep.subr.bf16.mxu1 %v2955_v38 }
 0x304   :  { %1452 = vmatpush1.bf16.msra.mxu1 %v2455_v0 }
 0x305   :  { %1453 = vmatprep.subr.bf16.mxu1 %v2458_v17 }
 0x308   :  { %1454 = vmatpush1.bf16.msra.mxu1 %v2463_v13 }
 0x309   :  { %1455 = vmatprep.subr.bf16.mxu1 %v2467_v27  ;;  %v1468_v27 = vld [vmem:[#allocation2 + $0x2] sm:$0x1] }
 0x30c   :  { %1456 = vmatpush1.bf16.msra.mxu1 %v2471_v5  ;;  %v1469_v5 = vld [vmem:[#allocation2 + $0x4] sm:$0x1] }
 0x30d   :  { %1457 = vmatprep.subr.bf16.mxu1 %v2475_v23 }
 0x310   :  { %1458 = vmatpush1.bf16.msra.mxu1 %v2479_v4 }
 0x313   :  { %1460 = vmatmul.mubr.bf16.vlgmr.msra.gmra.mrb[16].mxu1 %v1343_v53 }
 0x3a6   :  { %v1379_v21 = vpop.f32.mrb[12].mxu1  ;;  %v1420_v41 = vpop.f32.mrb[24].mxu0 }
 0x3a7   :  { %v1381_v31 = vpop.f32.mrb[13].mxu1  ;;  %v1422_v12 = vpop.f32.mrb[25].mxu0  ;;  %v1380_v17 = vadd.f32 %v1379_v21, %v2566_v29  ;;  %v1421_v4 = vadd.f32 %v1420_v41, %v2573_v2 }
 0x3a8   :  { %v1383_v39 = vpop.f32.mrb[14].mxu1  ;;  %v1424_v9 = vpop.f32.mrb[26].mxu0  ;;  %v1382_v13 = vadd.f32 %v1381_v31, %v2569_v37  ;;  %v1423_v11 = vadd.f32 %v1422_v12, %v2575_v24 }
 0x3a9   :  { %v1384_v0 = vpop.f32.mrb[15].mxu1  ;;  %v1425_v18 = vpop.f32.mrb[27].mxu0  ;;  %v1474_v35 = vadd.f32 %v1468_v27, %v1380_v17  ;;  %v1488_v47 = vadd.f32 %v1470_v19, %v1421_v4  ;;  %v2090_v9 = vmov 839922192   ;;  %v1562_v19 = vld [vmem:[%s2774_s5] sm:$0x3] }
 0x3aa   :  { %v1475_v25 = vadd.f32 %v1469_v5, %v1382_v13  ;;  %v1489_v33 = vadd.f32 %v1471_v22, %v1423_v11  ;;  %v1532_v0 = vunpack.c.l.s4 %v2090_v9  ;;  %v2981_v18 = vld [vmem:[#allocation14_spill] sm:$0xff]  ;;  %v2982_v22 = vld [vmem:[#allocation15_spill] sm:$0xff]  ;;  %s1596_s5 = sshll.u32 %s2091_s19, 4  ;;  %s1597_s5 = int_to_ptr.vmem [resolvable:$true] %s1596_s5 }
 0x3ab   :  { %v1476_v23 = vsub.f32 0.0, %v1474_v35  ;;  %v1490_v29 = vsub.f32 0.0, %v1488_v47  ;;  %v1575_v47 = vld [vmem:[%s2775_s6] sm:$0x3]  ;;  %s2056_s6 = scalar_lea.vmem %s1597_s5, 128  ;;  %p2061_p11 = scmp.lt.s32.totalorder %s1597_s5, %s1597_s5 }
 0x3ac   :  { %v1477_v45 = vsub.f32 0.0, %v1475_v25  ;;  %v1491_v37 = vsub.f32 0.0, %v1489_v33  ;;  %v1567_v33 = vrot.slane %v1562_v19, %v2982_v22  ;;  %p2057_p10 = scmp.ne.s32.totalorder %s1597_s5, %s2056_s6  ;;  %p2062_p12 = scmp.lt.s32.totalorder %s2056_s6, %s2056_s6 }
 0x3ad   :  { %v1478_v16 = vmul.f32 1.442695, %v1476_v23  ;;  %v1492_v15 = vmul.f32 1.442695, %v1490_v29  ;;  %v2983_v29 = vld [vmem:[#allocation63_spill] sm:$0xff] }
 0x3ae   :  { %v1480_v14 = vmul.f32 1.442695, %v1477_v45  ;;  %v1494_v8 = vmul.f32 1.442695, %v1491_v37  ;;  %v1571_v37 = vrot.slane %v1562_v19, %v2983_v29  ;;  %p2063_p13 = por %p2062_p12, %p2061_p11 }
 0x3af   :  { %1958 = vpow2.f32 %v1478_v16 }
 0x3b0   :  { %1960 = vpow2.f32 %v1480_v14  ;;  %p2064_p0 = pnand %p2063_p13, %p2057_p10 }
 0x3b1   :  { %1962 = vpow2.f32 %v1492_v15  ;;  %v1580_v15 = vrot.slane %v1575_v47, %v2982_v22 }
 0x3b2   :  { %1964 = vpow2.f32 %v1494_v8  ;;  %v1584_v8 = vrot.slane %v1575_v47, %v2983_v29 }
 0x3b9   :  { %v1959_v26 = vpop.eup %1958 }
 0x3ba   :  { %v1961_v28 = vpop.eup %1960  ;;  %v1482_v30 = vadd.f32 1.0, %v1959_v26 }
 0x3bb   :  { %v1483_v2 = vadd.f32 1.0, %v1961_v28  ;;  %v1963_v24 = vpop.eup %1962 }
 0x3bc   :  { %1966 = vrcp.f32 %v1482_v30  ;;  %v1965_v32 = vpop.eup %1964  ;;  %v1496_v34 = vadd.f32 1.0, %v1963_v24  ;;  %v1572_v30 = vcombine.low %v1567_v33, %v1571_v37  ;;  %v1585_v24 = vcombine.low %v1580_v15, %v1584_v8 }
 0x3bd   :  { %1968 = vrcp.f32 %v1483_v2  ;;  %v1497_v36 = vadd.f32 1.0, %v1965_v32 }
 0x3be   :  { %1970 = vrcp.f32 %v1496_v34 }
 0x3bf   :  { %1972 = vrcp.f32 %v1497_v36 }
 0x3c6   :  { %v1967_v57 = vpop.eup %1966 }
 0x3c7   :  { %v1969_v60 = vpop.eup %1968 }
 0x3c8   :  { %v1971_v10 = vpop.eup %1970 }
 0x3c9   :  { %v1973_v20 = vpop.eup %1972 }
 0x3ca   :  { %v1509_v42 = vsub.f32 1.0, %v1973_v20  ;;  %v1513_v44 = vmul.f32 %v1973_v20, %v2695_v50 }
 0x3e6   :  { %v1461_v38 = vpop.f32.mrb[16].mxu1 }
 0x3e7   :  { %v1462_v54 = vadd.f32 %v1461_v38, %v2979_v51  ;;  %v1463_v56 = vpop.f32.mrb[17].mxu1  ;;  %v1508_v51 = vsub.f32 1.0, %v1971_v10 }
 0x3e8   :  { %v1464_v58 = vadd.f32 %v1463_v56, %v2980_v55  ;;  %v1465_v59 = vpop.f32.mrb[18].mxu1  ;;  %v1512_v55 = vmul.f32 %v1971_v10, %v2693_v48  ;;  %v1533_v48 = vunpack.c.0.s8 %v1532_v0 }
 0x3e9   :  { %v1502_v61 = vmul.f32 %v1967_v57, %v1462_v54  ;;  %v1466_v62 = vpop.f32.mrb[19].mxu1 }
 0x3ea   :  { %v1503_v1 = vmul.f32 %v1969_v60, %v1464_v58  ;;  %v1536_v17 = vsub.s32 %v1533_v48, %v2981_v18 }
 0x3eb   :  { %v1504_v3 = vadd.f32 %v1502_v61, %v1472_v63 }
 0x3ec   :  { %v1505_v6 = vadd.f32 %v1503_v1, %v1473_v7 }
 0x3ed   :  { %1974 = vtanh.f32 %v1504_v3 }
 0x3ee   :  { %1976 = vtanh.f32 %v1505_v6 }
 0x3f7   :  { %v1975_v40 = vpop.eup %1974 }
 0x3f8   :  { %v1977_v49 = vpop.eup %1976  ;;  %v1510_v43 = vmul.f32 %v1975_v40, %v1508_v51 }
 0x3f9   :  { %v1511_v46 = vmul.f32 %v1977_v49, %v1509_v42 }
 0x3fa   :  { %v1514_v52 = vadd.f32 %v1512_v55, %v1510_v43 }
 0x3fb   :  { %v1515_v53 = vadd.f32 %v1513_v44, %v1511_v46 }
 0x3fc   :  { %1516 = vst [vmem:[#allocation3 + $0x2] sm:$0x1] %v1514_v52 }
 0x3fd   :  { %1517 = vst [vmem:[#allocation3 + $0x4] sm:$0x1] %v1515_v53 }
 0x404   :  { %v1518_v21 = vld [vmem:[#allocation3] sm:$0x77] }
 0x405   :  { %v1520_v41 = vcombine.high %v1518_v21, %v1518_v21  ;;  %v1523_v31 = vsel %vm1522_vm1, %v1518_v21, 0.0 }
 0x407   :  { %v1524_v12 = vsel %vm1522_vm1, %v1520_v41, 0.0 }
 0x408   :  { %v1525_v39 = vadd.f32 %v1524_v12, %v1523_v31 }
 0x40a   :  { %1526 = vadd.xlane.f32.xlu0 %v1525_v39 }
 0x497   :  { %v1527_v50 = vpop.xlane.xlu0 %1526 }
 0x498   :  { %v1529_v13 = vmul.f32 0.00390625, %v1527_v50 }
 0x49a   :  { %v1537_v27 = vrot.slane %v1529_v13, %v1536_v17 }
 0x49c   :  { %v1539_v35 = vsub.f32 %v1518_v21, %v1537_v27 }
 0x49e   :  { %v1540_v5 = vmul.f32 %v1539_v35, %v1539_v35 }
 0x4a0   :  { %v1542_v25 = vcombine.high %v1540_v5, %v1540_v5  ;;  %v1544_v23 = vsel %vm1522_vm1, %v1540_v5, 0.0 }
 0x4a2   :  { %v1545_v45 = vsel %vm1522_vm1, %v1542_v25, 0.0 }
 0x4a3   :  { %v1546_v4 = vadd.f32 %v1545_v45, %v1544_v23 }
 0x4a5   :  { %1547 = vadd.xlane.f32.xlu0 %v1546_v4 }
 0x532   :  { %v1548_v16 = vpop.xlane.xlu0 %1547 }
 0x533   :  { %v1549_v11 = vmul.f32 0.00390625, %v1548_v16 }
 0x535   :  { %v1550_v14 = vadd.f32 1e-05, %v1549_v11 }
 0x537   :  { %1978 = vrsqrt.f32 %v1550_v14 }
 0x541   :  { %v1979_v26 = vpop.eup %1978 }
 0x542   :  { %v1559_v28 = vrot.slane %v1979_v26, %v1536_v17 }
 0x544   :  { %v1561_v2 = vmul.f32 %v1559_v28, %v1539_v35 }
 0x546   :  { %v1574_v32 = vmul.f32 %v1572_v30, %v1561_v2 }
 0x548   :  { %v1587_v34 = vadd.f32 %v1585_v24, %v1574_v32 }
 0x54a   :  { %v1588_v36 = vmax.f32 %v1587_v34, 0.0 }
 0x54c   :  { %1589 = vst [vmem:[#allocation10] sm:$0x77] %v1588_v36 }
 0x54d   :  { %2067 = shalt.err (!%p2064_p0)
}
 0x54e   :  { %s2068_s22 = scalar_lea.hbm %s2776_s7, 128 }
 0x54f   :  { %p2069_p1 = scmp.ne.s32.totalorder %s2776_s7, %s2068_s22  ;;  %p2072_p2 = scmp.lt.u32.totalorder %s2068_s22, %s2776_s7 }
 0x551   :  { %p2074_p3 = pnand %p2072_p2, %p2069_p1 }
 0x553   :  { %2077 = shalt.err (!%p2074_p3)
}
 0x554   :  { %1599 = dma.vmem_to_hbm [thread:$0]  %s1597_s5, 128, %s2776_s7, [#allocation6]  }
 0x555   :  { %2082 = dma.done.wait [#allocation6], 128  }
 0x556   :  { %2083 = vsyncadd [#allocation6], 4294967168 }
 0x557   :  { %1603 = vsyncpa [#allocation5], 1 }
 0x558   :  { %1604 = vsyncpa [#allocation8], 1 }
 0x559   :  { %1605 = vsyncpa [#allocation6], 1 }

</bundles_post_ra>
